<compile_context>
chip_gen: v7x
topology: tpu7x:2x2x1
jax: 0.10.0
libtpu: 0.0.40
codegen_flags: <defaults>
</compile_context>

<pallas_src>
import functools

import jax
import jax.numpy as jnp
from jax.experimental import pallas as pl
from jax.experimental.pallas import tpu as pltpu

EPS = 1e-12
POWER_ITERATIONS = 1


def _round_up(a, b):
    return (a + b - 1) // b * b


def _device_kind():
    try:
        return jax.devices()[0].device_kind.lower()
    except Exception:
        return ""


_KIND = _device_kind()
_IS_V7 = ("v7" in _KIND) or ("7x" in _KIND)
_HAS_256_MXU = _IS_V7 or ("v6" in _KIND) or ("trillium" in _KIND)


def _vmem_bytes(shape, itemsize):
    """Rough VMEM footprint of one block, including (8,128) trailing-tile padding."""
    dims = list(shape)
    dims[-1] = _round_up(dims[-1], 128)
    if len(dims) >= 2:
        dims[-2] = _round_up(dims[-2], 8)
    n = 1
    for d in dims:
        n *= d
    return n * itemsize


# --------------------------------------------------------------------------- power iteration
def _power_iter_kernel(w_ref, u_ref, inv_sigma_ref, u_new_ref):
    """One-shot spectral-norm power iteration. w_ref: (OC, K) f32; u_ref: (1, OC) f32."""
    w = w_ref[...]
    u = u_ref[...]
    wv = None
    for _ in range(POWER_ITERATIONS):
        wtu = jnp.dot(u, w, preferred_element_type=jnp.float32)        # (1, K)
        v_nrm = jnp.sqrt(jnp.sum(wtu * wtu, keepdims=True))            # (1, 1)
        v = wtu * pl.reciprocal(v_nrm + EPS)                           # l2normalize
        wv = jnp.dot(w, v.T, preferred_element_type=jnp.float32)       # (OC, 1)
        u_nrm = jnp.sqrt(jnp.sum(wv * wv, keepdims=True))              # (1, 1)
        u = (wv * pl.reciprocal(u_nrm + EPS)).T                        # (1, OC)
    sigma = jnp.sum(u.T * wv, keepdims=True)                           # (1, 1), updated u
    inv_sigma_ref[...] = pl.reciprocal(sigma)
    u_new_ref[...] = u


# --------------------------------------------------------------------------- conv kernel
def _conv_kernel(inv_sigma_ref, x_ref, w_ref, b_ref, o_ref, col_ref, *, wp, s_out, ic):
    # inv_sigma_ref: (1,)              f32  SMEM scalar
    # x_ref:         (1, M, IC)        bf16 one padded, flattened sample (IC on lanes)
    # w_ref:         (9*IC, OCt)       bf16 un-normalized taps, k = (kh*3+kw)*IC + ic
    # b_ref:         (1, OCt)          f32
    # o_ref:         (1, s_out, OCt)   f32  s_out = H*(W+2) rows (2 garbage cols dropped later)
    # col_ref:       (s_out, 9*IC)     bf16 VMEM scratch: per-sample tap-column matrix
    j = pl.program_id(1)

    # Build the per-sample column matrix ONCE; it is reused by every OC tile.
    @pl.when(j == 0)
    def _build_columns():
        for dy in range(3):
            for dx in range(3):
                t = dy * 3 + dx
                # 3x3 tap (dy,dx) == contiguous shifted window of the flattened padded input
                col_ref[:, pl.ds(t * ic, ic)] = x_ref[0, pl.ds(dy * wp + dx, s_out), :]

    # Single K = 9*IC bf16 matmul, f32 accumulation stays inside the MXU.
    acc = jnp.dot(col_ref[...], w_ref[...], preferred_element_type=jnp.float32)
    # Fold 1/sigma (spectral normalization) into the f32 epilogue, then add bias.
    o_ref[0] = acc * inv_sigma_ref[0] + b_ref[...]


# --------------------------------------------------------------------------- wrapper
def spectral_norm_conv2d(x, w_bar, bias, u):
    """x: (N, IC, H, W) f32; w_bar: (OC, IC, 3, 3); bias: (OC,); u: (OC,).

    Returns (y, u_new); u_new mirrors PyTorch's in-place update of the `weight_u` buffer.
    """
    N, IC, H, W = x.shape
    OC, IC2, KH, KW = w_bar.shape
    assert IC2 == IC and (KH, KW) == (3, 3)
    Hp, Wp = H + 2, W + 2
    s_out = H * Wp              # output rows per sample (incl. 2 garbage cols per row)
    M = Hp * Wp + 2             # flattened padded spatial extent per sample (+1 each end)
    K = KH * KW * IC            # merged contraction dim (9 taps x IC channels)

    # ---- 1. power iteration + 1/sigma: tiny ungridded kernel, runs once per call ----
    # TODO(synk): for very wide layers (OC*K*4B beyond ~40 MB) tile the K dim / stream
    # w_flat from HBM instead of keeping it whole in VMEM (v7x has only 64 MiB).
    w_flat = w_bar.reshape(OC, K).astype(jnp.float32)
    inv_sigma, u_new = pl.pallas_call(
        _power_iter_kernel,
        out_shape=(jax.ShapeDtypeStruct((1, 1), jnp.float32),
                   jax.ShapeDtypeStruct((1, OC), jnp.float32)),
        in_specs=[pl.BlockSpec(memory_space=pltpu.MemorySpace.VMEM)] * 2,
        out_specs=(pl.BlockSpec(memory_space=pltpu.MemorySpace.VMEM),) * 2,
    )(w_flat, u.reshape(1, OC).astype(jnp.float32))

    # ---- 2. tiling: lane-dense OC (pad to the tile); 256-wide tiles on v6e/v7x ----
    oc_tile = 256 if (_HAS_256_MXU and _round_up(OC, 128) >= 256) else 128
    oc_pad = _round_up(OC, oc_tile)

    # Un-normalized bf16 taps, layout ((kh*3+kw)*IC + ic, oc). 1/sigma is applied inside
    # the conv kernel, so there is no XLA elementwise pass / HBM round trip over weights,
    # and the activation/weight prep no longer serializes behind the power iteration.
    w_taps = w_bar.astype(jnp.bfloat16).transpose(2, 3, 1, 0).reshape(K, OC)
    w_taps = jnp.pad(w_taps, ((0, 0), (0, oc_pad - OC)))               # zero cols -> safe lanes
    bias2 = jnp.pad(bias.astype(jnp.float32), (0, oc_pad - OC)).reshape(1, oc_pad)

    # ---- 3. activations: NCHW -> NHWC (channels lane-dense), zero-pad spatially,
    #         flatten spatial per sample, +1 zero at each end so every 3x3 tap is an
    #         in-bounds shifted slice.  No 9x im2col materialization in HBM. ----
    xq = jnp.transpose(x, (0, 2, 3, 1)).astype(jnp.bfloat16)           # (N, H, W, IC)
    xq = jnp.pad(xq, ((0, 0), (1, 1), (1, 1), (0, 0)))                 # (N, Hp, Wp, IC)
    xq = xq.reshape(N, Hp * Wp, IC)
    xq = jnp.pad(xq, ((0, 0), (1, 1), (0, 0)))                         # (N, M, IC)

    # ---- 4. VMEM budget from the actual block sizes (per-generation cap) ----
    x_bufs = 1 if _IS_V7 else 2
    need = (x_bufs * _vmem_bytes((1, M, IC), 2)
            + 2 * _vmem_bytes((K, oc_tile), 2)
            + 2 * _vmem_bytes((1, oc_tile), 4)
            + 2 * _vmem_bytes((1, s_out, oc_tile), 4)
            + _vmem_bytes((s_out, K), 2))
    cap = (48 if _IS_V7 else 100) * (1 << 20)
    vmem_limit = int(min(max(need + need // 4 + (4 << 20), 32 << 20), cap))

    x_spec_kwargs = {}
    if _IS_V7:
        # x only changes along the outer (n) axis; single-buffer it on v7x's 64 MiB VMEM.
        x_spec_kwargs["pipeline_mode"] = pl.Buffered(1)

    grid = (N, oc_pad // oc_tile)   # n outer, oc inner -> per-sample column scratch reused
    kernel = functools.partial(_conv_kernel, wp=Wp, s_out=s_out, ic=IC)
    out = pl.pallas_call(
        kernel,
        out_shape=jax.ShapeDtypeStruct((N, s_out, oc_pad), jnp.float32),
        grid_spec=pltpu.PrefetchScalarGridSpec(
            num_scalar_prefetch=0,
            grid=grid,
            in_specs=[
                pl.BlockSpec(memory_space=pltpu.MemorySpace.SMEM),               # 1/sigma
                pl.BlockSpec((1, M, IC), lambda n, j: (n, 0, 0), **x_spec_kwargs),
                pl.BlockSpec((K, oc_tile), lambda n, j: (0, j)),
                pl.BlockSpec((1, oc_tile), lambda n, j: (0, j)),
            ],
            out_specs=pl.BlockSpec((1, s_out, oc_tile), lambda n, j: (n, 0, j)),
            scratch_shapes=[pltpu.VMEM((s_out, K), jnp.bfloat16)],
        ),
        compiler_params=pltpu.CompilerParams(
            # n is independent (sharded across v7x's two TCs); the oc axis reuses the
            # per-sample column scratch, so it must stay sequential on one core.
            dimension_semantics=("parallel", "arbitrary"),
            vmem_limit_bytes=vmem_limit,
        ),
    )(inv_sigma.reshape(1), xq, w_taps, bias2)

    # (N, H*Wp, OCp) -> (N, H, Wp, OCp) -> drop 2 garbage cols + OC padding -> NCHW
    y = out.reshape(N, H, Wp, oc_pad)[:, :, 1:W + 1, :OC].transpose(0, 3, 1, 2)
    # TODO(synk): for very large H*W*IC per sample, add spatial row tiling with a 2*Wp+2
    # halo (memory_space=pl.ANY + pltpu.make_async_copy) so the whole-sample block and the
    # (s_out, 9*IC) column scratch need not be VMEM-resident (required on v7x's 64 MiB).
    return y, u_new.reshape(OC)


def _reference(x, w_bar, bias, u):
    """Pure-JAX f32 reference mirroring the PyTorch math."""
    OC = w_bar.shape[0]
    w = w_bar.reshape(OC, -1)
    uu = u
    v = None
    for _ in range(POWER_ITERATIONS):
        v = w.T @ uu
        v = v / (jnp.linalg.norm(v) + EPS)
        uu = w @ v
        uu = uu / (jnp.linalg.norm(uu) + EPS)
    sigma = uu @ (w @ v)
    weight = w_bar / sigma
    y = jax.lax.conv_general_dilated(
        x, weight, window_strides=(1, 1), padding=((1, 1), (1, 1)),
        dimension_numbers=("NCHW", "OIHW", "NCHW"))
    return y + bias.reshape(1, OC, 1, 1), uu


if __name__ == "__main__":
    key = jax.random.PRNGKey(0)
    k_x, k_w, k_b, k_u = jax.random.split(key, 4)

    N, IC, H, W = 2, 4, 16, 16
    OC, KH, KW = 8, 3, 3

    x = jax.random.normal(k_x, (N, IC, H, W), dtype=jnp.float32)
    w_bar = jax.random.normal(k_w, (OC, IC, KH, KW), dtype=jnp.float32) * 0.1
    bias = jax.random.normal(k_b, (OC,), dtype=jnp.float32) * 0.01
    u0 = jax.random.normal(k_u, (OC,), dtype=jnp.float32)
    u0 = u0 / (jnp.linalg.norm(u0) + EPS)      # l2normalize(u) as in _make_params

    fwd = jax.jit(spectral_norm_conv2d)
    y, u_new = fwd(x, w_bar, bias, u0)
    jax.block_until_ready((y, u_new))

    y_ref, u_ref = _reference(x, w_bar, bias, u0)
    assert y.shape == (N, OC, H, W)
    # bf16 MXU operands with f32 accumulation -> loosened tolerance vs the f32 reference.
    assert jnp.allclose(y, y_ref, atol=2e-2, rtol=2e-2), float(jnp.max(jnp.abs(y - y_ref)))
    assert jnp.allclose(u_new, u_ref, atol=5e-3, rtol=5e-3)
    print("KERNEL_OK")
</pallas_src>

<mosaic_0001>
module attributes {stable_mosaic.version = 11 : i64} {
  func.func @_power_iter_kernel(%arg0: memref<8x36xf32, #tpu.memory_space<vmem>>, %arg1: memref<1x8xf32, #tpu.memory_space<vmem>>, %arg2: memref<1x1xf32, #tpu.memory_space<vmem>>, %arg3: memref<1x8xf32, #tpu.memory_space<vmem>>) attributes {dimension_semantics = [], scalar_prefetch = 0 : i64, scratch_operands = 0 : i64, tpu.core_type = #tpu.core_type<tc>} {
    %c0 = arith.constant 0 : index
    %c0_0 = arith.constant 0 : index
    %0 = vector.load %arg0[%c0, %c0_0] : memref<8x36xf32, #tpu.memory_space<vmem>>, vector<8x36xf32>
    %c0_1 = arith.constant 0 : index
    %c0_2 = arith.constant 0 : index
    %1 = vector.load %arg1[%c0_1, %c0_2] : memref<1x8xf32, #tpu.memory_space<vmem>>, vector<1x8xf32>
    %cst = arith.constant dense<0.000000e+00> : vector<1x36xf32>
    %2 = tpu.matmul %1, %0, %cst {dimension_numbers = #tpu.dot_dimension_numbers<[1], [0], [0], [1], [0, 0, 1, 1], [], []>} : vector<1x8xf32>, vector<8x36xf32>, vector<1x36xf32> -> vector<1x36xf32>
    %3 = arith.mulf %2, %2 : vector<1x36xf32>
    %4 = vector.shape_cast %3 : vector<1x36xf32> to vector<1x1x36xf32>
    %cst_3 = arith.constant dense<0.000000e+00> : vector<1xf32>
    %5 = vector.multi_reduction <add>, %4, %cst_3 [1, 2] : vector<1x1x36xf32> to vector<1xf32>
    %6 = vector.shape_cast %5 : vector<1xf32> to vector<1x1x1xf32>
    %7 = vector.extract %6[0, 0, 0] : f32 from vector<1x1x1xf32>
    %8 = vector.broadcast %7 : f32 to vector<1x1xf32>
    %9 = math.sqrt %8 : vector<1x1xf32>
    %cst_4 = arith.constant 9.99999996E-13 : f32
    %10 = vector.broadcast %cst_4 : f32 to vector<1x1xf32>
    %11 = arith.addf %9, %10 : vector<1x1xf32>
    %12 = tpu.reciprocal %11 : vector<1x1xf32> -> vector<1x1xf32>
    %13 = vector.broadcast %12 : vector<1x1xf32> to vector<1x36xf32>
    %14 = arith.mulf %2, %13 : vector<1x36xf32>
    %15 = tpu.transpose %14, [1, 0] : vector<1x36xf32> -> vector<36x1xf32>
    %cst_5 = arith.constant dense<0.000000e+00> : vector<8x1xf32>
    %16 = tpu.matmul %0, %15, %cst_5 {dimension_numbers = #tpu.dot_dimension_numbers<[1], [0], [0], [1], [0, 0, 1, 1], [], []>} : vector<8x36xf32>, vector<36x1xf32>, vector<8x1xf32> -> vector<8x1xf32>
    %17 = arith.mulf %16, %16 : vector<8x1xf32>
    %18 = vector.shape_cast %17 : vector<8x1xf32> to vector<1x8x1xf32>
    %cst_6 = arith.constant dense<0.000000e+00> : vector<1xf32>
    %19 = vector.multi_reduction <add>, %18, %cst_6 [1, 2] : vector<1x8x1xf32> to vector<1xf32>
    %20 = vector.shape_cast %19 : vector<1xf32> to vector<1x1x1xf32>
    %21 = vector.extract %20[0, 0, 0] : f32 from vector<1x1x1xf32>
    %22 = vector.broadcast %21 : f32 to vector<1x1xf32>
    %23 = math.sqrt %22 : vector<1x1xf32>
    %cst_7 = arith.constant 9.99999996E-13 : f32
    %24 = vector.broadcast %cst_7 : f32 to vector<1x1xf32>
    %25 = arith.addf %23, %24 : vector<1x1xf32>
    %26 = tpu.reciprocal %25 : vector<1x1xf32> -> vector<1x1xf32>
    %27 = vector.broadcast %26 : vector<1x1xf32> to vector<8x1xf32>
    %28 = arith.mulf %16, %27 : vector<8x1xf32>
    %29 = tpu.transpose %28, [1, 0] : vector<8x1xf32> -> vector<1x8xf32>
    %30 = tpu.transpose %29, [1, 0] : vector<1x8xf32> -> vector<8x1xf32>
    %31 = arith.mulf %30, %16 : vector<8x1xf32>
    %32 = vector.shape_cast %31 : vector<8x1xf32> to vector<1x8x1xf32>
    %cst_8 = arith.constant dense<0.000000e+00> : vector<1xf32>
    %33 = vector.multi_reduction <add>, %32, %cst_8 [1, 2] : vector<1x8x1xf32> to vector<1xf32>
    %34 = vector.shape_cast %33 : vector<1xf32> to vector<1x1x1xf32>
    %35 = vector.extract %34[0, 0, 0] : f32 from vector<1x1x1xf32>
    %36 = vector.broadcast %35 : f32 to vector<1x1xf32>
    %37 = tpu.reciprocal %36 : vector<1x1xf32> -> vector<1x1xf32>
    %c0_9 = arith.constant 0 : index
    %c0_10 = arith.constant 0 : index
    %38 = vector.load %arg2[%c0_9, %c0_10] : memref<1x1xf32, #tpu.memory_space<vmem>>, vector<1x1xf32>
    tpu.vector_store %arg2[%c0_9, %c0_10], %37 {strides = array<i32>} : memref<1x1xf32, #tpu.memory_space<vmem>>, vector<1x1xf32>,
    %c0_11 = arith.constant 0 : index
    %c0_12 = arith.constant 0 : index
    %39 = vector.load %arg3[%c0_11, %c0_12] : memref<1x8xf32, #tpu.memory_space<vmem>>, vector<1x8xf32>
    tpu.vector_store %arg3[%c0_11, %c0_12], %29 {strides = array<i32>} : memref<1x8xf32, #tpu.memory_space<vmem>>, vector<1x8xf32>,
    return
  }
}

module attributes {stable_mosaic.version = 11 : i64} {
  func.func @_conv_kernel(%arg0: i32, %arg1: i32, %arg2: memref<1xf32, #tpu.memory_space<smem>>, %arg3: memref<1x326x4xbf16, #tpu.memory_space<vmem>>, %arg4: memref<36x128xbf16, #tpu.memory_space<vmem>>, %arg5: memref<1x128xf32, #tpu.memory_space<vmem>>, %arg6: memref<1x288x128xf32, #tpu.memory_space<vmem>>, %arg7: memref<288x36xbf16, #tpu.memory_space<vmem>>) attributes {dimension_semantics = [#tpu.dimension_semantics<parallel>, #tpu.dimension_semantics<arbitrary>], iteration_bounds = array<i64: 2, 1>, scalar_prefetch = 0 : i64, scratch_operands = 1 : i64, tpu.core_type = #tpu.core_type<tc>, window_params = [{transform_indices = @transform_0, window_bounds = array<i64: 1>}, {transform_indices = @transform_1, window_bounds = array<i64: 1, 326, 4>}, {transform_indices = @transform_2, window_bounds = array<i64: 36, 128>}, {transform_indices = @transform_3, window_bounds = array<i64: 1, 128>}, {transform_indices = @transform_4, window_bounds = array<i64: 1, 288, 128>}]} {
    %c0_i32 = arith.constant 0 : i32
    %0 = arith.cmpi eq, %arg1, %c0_i32 : i32
    %1 = arith.extui %0 : i1 to i32
    %c0_i32_0 = arith.constant 0 : i32
    %2 = arith.cmpi ne, %1, %c0_i32_0 : i32
    scf.if %2 {
      %c0_10 = arith.constant 0 : index
      %c0_11 = arith.constant 0 : index
      %c0_12 = arith.constant 0 : index
      %15 = vector.load %arg3[%c0_10, %c0_11, %c0_12] : memref<1x326x4xbf16, #tpu.memory_space<vmem>>, vector<1x288x4xbf16>
      %16 = vector.shape_cast %15 : vector<1x288x4xbf16> to vector<288x4xbf16>
      %c0_13 = arith.constant 0 : index
      %c0_14 = arith.constant 0 : index
      %17 = vector.load %arg7[%c0_13, %c0_14] : memref<288x36xbf16, #tpu.memory_space<vmem>>, vector<288x4xbf16>
      tpu.vector_store %arg7[%c0_13, %c0_14], %16 {strides = array<i32>} : memref<288x36xbf16, #tpu.memory_space<vmem>>, vector<288x4xbf16>,
      %c0_15 = arith.constant 0 : index
      %c1 = arith.constant 1 : index
      %c0_16 = arith.constant 0 : index
      %18 = vector.load %arg3[%c0_15, %c1, %c0_16] : memref<1x326x4xbf16, #tpu.memory_space<vmem>>, vector<1x288x4xbf16>
      %19 = vector.shape_cast %18 : vector<1x288x4xbf16> to vector<288x4xbf16>
      %c0_17 = arith.constant 0 : index
      %c4 = arith.constant 4 : index
      %20 = vector.load %arg7[%c0_17, %c4] : memref<288x36xbf16, #tpu.memory_space<vmem>>, vector<288x4xbf16>
      tpu.vector_store %arg7[%c0_17, %c4], %19 {strides = array<i32>} : memref<288x36xbf16, #tpu.memory_space<vmem>>, vector<288x4xbf16>,
      %c0_18 = arith.constant 0 : index
      %c2 = arith.constant 2 : index
      %c0_19 = arith.constant 0 : index
      %21 = vector.load %arg3[%c0_18, %c2, %c0_19] : memref<1x326x4xbf16, #tpu.memory_space<vmem>>, vector<1x288x4xbf16>
      %22 = vector.shape_cast %21 : vector<1x288x4xbf16> to vector<288x4xbf16>
      %c0_20 = arith.constant 0 : index
      %c8 = arith.constant 8 : index
      %23 = vector.load %arg7[%c0_20, %c8] : memref<288x36xbf16, #tpu.memory_space<vmem>>, vector<288x4xbf16>
      tpu.vector_store %arg7[%c0_20, %c8], %22 {strides = array<i32>} : memref<288x36xbf16, #tpu.memory_space<vmem>>, vector<288x4xbf16>,
      %c0_21 = arith.constant 0 : index
      %c18 = arith.constant 18 : index
      %c0_22 = arith.constant 0 : index
      %24 = vector.load %arg3[%c0_21, %c18, %c0_22] : memref<1x326x4xbf16, #tpu.memory_space<vmem>>, vector<1x288x4xbf16>
      %25 = vector.shape_cast %24 : vector<1x288x4xbf16> to vector<288x4xbf16>
      %c0_23 = arith.constant 0 : index
      %c12 = arith.constant 12 : index
      %26 = vector.load %arg7[%c0_23, %c12] : memref<288x36xbf16, #tpu.memory_space<vmem>>, vector<288x4xbf16>
      tpu.vector_store %arg7[%c0_23, %c12], %25 {strides = array<i32>} : memref<288x36xbf16, #tpu.memory_space<vmem>>, vector<288x4xbf16>,
      %c0_24 = arith.constant 0 : index
      %c19 = arith.constant 19 : index
      %c0_25 = arith.constant 0 : index
      %27 = vector.load %arg3[%c0_24, %c19, %c0_25] : memref<1x326x4xbf16, #tpu.memory_space<vmem>>, vector<1x288x4xbf16>
      %28 = vector.shape_cast %27 : vector<1x288x4xbf16> to vector<288x4xbf16>
      %c0_26 = arith.constant 0 : index
      %c16 = arith.constant 16 : index
      %29 = vector.load %arg7[%c0_26, %c16] : memref<288x36xbf16, #tpu.memory_space<vmem>>, vector<288x4xbf16>
      tpu.vector_store %arg7[%c0_26, %c16], %28 {strides = array<i32>} : memref<288x36xbf16, #tpu.memory_space<vmem>>, vector<288x4xbf16>,
      %c0_27 = arith.constant 0 : index
      %c20 = arith.constant 20 : index
      %c0_28 = arith.constant 0 : index
      %30 = vector.load %arg3[%c0_27, %c20, %c0_28] : memref<1x326x4xbf16, #tpu.memory_space<vmem>>, vector<1x288x4xbf16>
      %31 = vector.shape_cast %30 : vector<1x288x4xbf16> to vector<288x4xbf16>
      %c0_29 = arith.constant 0 : index
      %c20_30 = arith.constant 20 : index
      %32 = vector.load %arg7[%c0_29, %c20_30] : memref<288x36xbf16, #tpu.memory_space<vmem>>, vector<288x4xbf16>
      tpu.vector_store %arg7[%c0_29, %c20_30], %31 {strides = array<i32>} : memref<288x36xbf16, #tpu.memory_space<vmem>>, vector<288x4xbf16>,
      %c0_31 = arith.constant 0 : index
      %c36 = arith.constant 36 : index
      %c0_32 = arith.constant 0 : index
      %33 = vector.load %arg3[%c0_31, %c36, %c0_32] : memref<1x326x4xbf16, #tpu.memory_space<vmem>>, vector<1x288x4xbf16>
      %34 = vector.shape_cast %33 : vector<1x288x4xbf16> to vector<288x4xbf16>
      %c0_33 = arith.constant 0 : index
      %c24 = arith.constant 24 : index
      %35 = vector.load %arg7[%c0_33, %c24] : memref<288x36xbf16, #tpu.memory_space<vmem>>, vector<288x4xbf16>
      tpu.vector_store %arg7[%c0_33, %c24], %34 {strides = array<i32>} : memref<288x36xbf16, #tpu.memory_space<vmem>>, vector<288x4xbf16>,
      %c0_34 = arith.constant 0 : index
      %c37 = arith.constant 37 : index
      %c0_35 = arith.constant 0 : index
      %36 = vector.load %arg3[%c0_34, %c37, %c0_35] : memref<1x326x4xbf16, #tpu.memory_space<vmem>>, vector<1x288x4xbf16>
      %37 = vector.shape_cast %36 : vector<1x288x4xbf16> to vector<288x4xbf16>
      %c0_36 = arith.constant 0 : index
      %c28 = arith.constant 28 : index
      %38 = vector.load %arg7[%c0_36, %c28] : memref<288x36xbf16, #tpu.memory_space<vmem>>, vector<288x4xbf16>
      tpu.vector_store %arg7[%c0_36, %c28], %37 {strides = array<i32>} : memref<288x36xbf16, #tpu.memory_space<vmem>>, vector<288x4xbf16>,
      %c0_37 = arith.constant 0 : index
      %c38 = arith.constant 38 : index
      %c0_38 = arith.constant 0 : index
      %39 = vector.load %arg3[%c0_37, %c38, %c0_38] : memref<1x326x4xbf16, #tpu.memory_space<vmem>>, vector<1x288x4xbf16>
      %40 = vector.shape_cast %39 : vector<1x288x4xbf16> to vector<288x4xbf16>
      %c0_39 = arith.constant 0 : index
      %c32 = arith.constant 32 : index
      %41 = vector.load %arg7[%c0_39, %c32] : memref<288x36xbf16, #tpu.memory_space<vmem>>, vector<288x4xbf16>
      tpu.vector_store %arg7[%c0_39, %c32], %40 {strides = array<i32>} : memref<288x36xbf16, #tpu.memory_space<vmem>>, vector<288x4xbf16>,
    } else {
    }
    %c0 = arith.constant 0 : index
    %c0_1 = arith.constant 0 : index
    %3 = vector.load %arg7[%c0, %c0_1] : memref<288x36xbf16, #tpu.memory_space<vmem>>, vector<288x36xbf16>
    %c0_2 = arith.constant 0 : index
    %c0_3 = arith.constant 0 : index
    %4 = vector.load %arg4[%c0_2, %c0_3] : memref<36x128xbf16, #tpu.memory_space<vmem>>, vector<36x128xbf16>
    %cst = arith.constant dense<0.000000e+00> : vector<288x128xf32>
    %5 = tpu.matmul %3, %4, %cst {dimension_numbers = #tpu.dot_dimension_numbers<[1], [0], [0], [1], [0, 0, 1, 1], [], []>} : vector<288x36xbf16>, vector<36x128xbf16>, vector<288x128xf32> -> vector<288x128xf32>
    %c0_4 = arith.constant 0 : index
    %6 = memref.load %arg2[%c0_4] : memref<1xf32, #tpu.memory_space<smem>>
    %7 = vector.broadcast %6 : f32 to vector<288x128xf32>
    %8 = arith.mulf %5, %7 : vector<288x128xf32>
    %c0_5 = arith.constant 0 : index
    %c0_6 = arith.constant 0 : index
    %9 = vector.load %arg5[%c0_5, %c0_6] : memref<1x128xf32, #tpu.memory_space<vmem>>, vector<1x128xf32>
    %10 = vector.broadcast %9 : vector<1x128xf32> to vector<288x128xf32>
    %11 = arith.addf %8, %10 : vector<288x128xf32>
    %c0_7 = arith.constant 0 : index
    %c0_8 = arith.constant 0 : index
    %c0_9 = arith.constant 0 : index
    %12 = vector.load %arg6[%c0_7, %c0_8, %c0_9] : memref<1x288x128xf32, #tpu.memory_space<vmem>>, vector<1x288x128xf32>
    %13 = vector.shape_cast %12 : vector<1x288x128xf32> to vector<288x128xf32>
    %14 = vector.shape_cast %11 : vector<288x128xf32> to vector<1x288x128xf32>
    tpu.vector_store %arg6[%c0_7, %c0_8, %c0_9], %14 {strides = array<i32>} : memref<1x288x128xf32, #tpu.memory_space<vmem>>, vector<1x288x128xf32>,
    return
  }
  func.func @transform_0(%arg0: i32, %arg1: i32) -> i32 {
    %c0_i32 = arith.constant 0 : i32
    %c0_i32_0 = arith.constant 0 : i32
    return %c0_i32 : i32
  }
  func.func @transform_1(%arg0: i32, %arg1: i32) -> (i32, i32, i32) {
    %c0_i32 = arith.constant 0 : i32
    %c0_i32_0 = arith.constant 0 : i32
    %c0_i32_1 = arith.constant 0 : i32
    return %arg0, %c0_i32, %c0_i32_0 : i32, i32, i32
  }
  func.func @transform_2(%arg0: i32, %arg1: i32) -> (i32, i32) {
    %c0_i32 = arith.constant 0 : i32
    %c0_i32_0 = arith.constant 0 : i32
    return %c0_i32, %arg1 : i32, i32
  }
  func.func @transform_3(%arg0: i32, %arg1: i32) -> (i32, i32) {
    %c0_i32 = arith.constant 0 : i32
    %c0_i32_0 = arith.constant 0 : i32
    return %c0_i32, %arg1 : i32, i32
  }
  func.func @transform_4(%arg0: i32, %arg1: i32) -> (i32, i32, i32) {
    %c0_i32 = arith.constant 0 : i32
    %c0_i32_0 = arith.constant 0 : i32
    return %arg0, %c0_i32, %arg1 : i32, i32, i32
  }
}

</mosaic_0001>

<bundles_post_ra>
// kernel: spectral_norm_conv2d.2
= control target key start
LH: loop header
LB: loop body
LE: loop exit
PB: predicated region body
PF: predicated region fallthrough
CT: control target
= control target key end

     0   :  { %9 = vsyncpa [#allocation3], 0  ;;  %vm17_vm0 = vcmask 64512   ;;  %v331_v2 = vmov 0.0   ;;  %vm332_vm1 = vmmov 0   ;;  %s387_s0 = inlined_call_operand.vmem [shape: f32[8,36], index: 0, kind: input, shape index: {}]   ;;  %s388_s1 = inlined_call_operand.vmem [shape: f32[1,8], index: 1, kind: input, shape index: {}]   ;;  %s389_s2 = inlined_call_operand.hbm [shape: f32[1,1], index: 2, kind: output, shape index: {0}]   ;;  %s390_s3 = inlined_call_operand.hbm [shape: f32[1,8], index: 3, kind: output, shape index: {1}]  }
   0x1   :  { %v15_v0 = vld [vmem:[%s387_s0] sm:$0xff]  ;;  %258 = vmatprep.subr.mxu0 %v331_v2  ;;  %260 = vmatprep.mubr.msk.f32.mxu0 %vm332_vm1, %v331_v2 }
   0x2   :  { %v16_v1 = vld [vmem:[%s388_s1] sm:$0x1] }
   0x3   :  { %10 = vsyncpa [#allocation5], 0  ;;  %259 = vmatpush3.msra.mxu0 %v15_v0  ;;  %vm92_vm2 = vcmask 286720   ;;  %v114_v21 = vlaneseq  ;;  %vm119_vm5 = vcmask 293888   ;;  %vm124_vm6 = vcmask 7168   ;;  %s333_s16 = smov [#allocation4]  }
   0x4   :  { %261 = vmatmul.mubr.msk.f32.vlgmr.msra.gmra.mrb[0].mxu0 %vm17_vm0, %v16_v1  ;;  %vm225_vm9 = vcmask 57344   ;;  %s243_s17 = sshll.u32 %s333_s16, 4  ;;  %s244_s17 = int_to_ptr.vmem [resolvable:$true] %s243_s17 }
   0x5   :  { %v115_v22 = vshrl.u32 %v114_v21, 7  ;;  %s283_s18 = scalar_lea.vmem %s244_s17, 16  ;;  %s287_s19 = scalar_lea.vmem %s244_s17, 32 }
   0x6   :  { %p284_p0 = scmp.ne.s32.totalorder %s244_s17, %s283_s18  ;;  %p288_p1 = scmp.lt.s32.totalorder %s244_s17, %s244_s17 }
   0x7   :  { %v116_v23 = vsub.s32 0, %v115_v22  ;;  %p289_p2 = scmp.lt.s32.totalorder %s287_s19, %s283_s18 }
   0x9   :  { %p290_p3 = por %p289_p2, %p288_p1 }
   0xb   :  { %p291_p4 = pnand %p290_p3, %p284_p0 }
  0xd7   :  { %v87_v3 = vpop.f32.mrb[0].mxu0 }
  0xd8   :  { %v262_v4 = vpop.f32.mrb[1].mxu0  ;;  %v91_v5 = vmul.f32 %v87_v3, %v87_v3 }
  0xda   :  { %v93_v6 = vsel %vm92_vm2, %v91_v5, 0.0 }
  0xdb   :  { %94 = vadd.xlane.f32.xlu0 %v93_v6 }
 0x168   :  { %v95_v7 = vpop.xlane.xlu0 %94 }
 0x169   :  { %v96_v8 = vrot.slane %v95_v7, 4 }
 0x16b   :  { %v97_v9 = vadd.f32 %v96_v8, %v95_v7 }
 0x16d   :  { %v98_v10 = vrot.slane %v97_v9, 2 }
 0x16f   :  { %v99_v11 = vadd.f32 %v98_v10, %v97_v9 }
 0x171   :  { %v100_v12 = vrot.slane %v99_v11, 1 }
 0x173   :  { %v101_v13 = vadd.f32 %v100_v12, %v99_v11 }
 0x175   :  { %263 = vpush %v101_v13 }
 0x1a6   :  { %s264_s0 = spop %263 }
 0x1a7   :  { %v103_v14 = vstv %s264_s0 }
 0x1a8   :  { %273 = vrsqrt.f32 %v103_v14  ;;  %vm106_vm3 = vcmp.eq.f32.partialorder %v103_v14, inf  ;;  %v109_v17 = vand.u32 2147483648, %v103_v14  ;;  %vm108_vm4 = vcmp.eq.f32.partialorder %v103_v14, 0.0 }
 0x1b2   :  { %v274_v15 = vpop.eup %273 }
 0x1b3   :  { %v105_v16 = vmul.f32 %v274_v15, %v103_v14 }
 0x1b5   :  { %v107_v18 = vsel %vm106_vm3, %v103_v14, %v105_v16 }
 0x1b6   :  { %v110_v19 = vsel %vm108_vm4, %v109_v17, %v107_v18 }
 0x1b7   :  { %v111_v20 = vadd.f32 1e-12, %v110_v19 }
 0x1b9   :  { %275 = vrcp.f32 %v111_v20 }
 0x1c3   :  { %v276_v24 = vpop.eup %275 }
 0x1c4   :  { %v113_v25 = vmul.f32 %v276_v24, %v87_v3 }
 0x1c6   :  { %v117_v26 = vrot.slane %v113_v25, %v116_v23 }
 0x1c8   :  { %v118_v27 = vmul.f32 %v117_v26, %v15_v0 }
 0x1ca   :  { %v120_v28 = vsel %vm119_vm5, %v118_v27, 0.0 }
 0x1cb   :  { %121 = vadd.xlane.f32.xlu0 %v120_v28 }
 0x258   :  { %v122_v29 = vpop.xlane.xlu0 %121 }
 0x259   :  { %v123_v30 = vmul.f32 %v122_v29, %v122_v29 }
 0x25b   :  { %v125_v31 = vsel %vm124_vm6, %v123_v30, 0.0 }
 0x25c   :  { %126 = vadd.xlane.f32.xlu1 %v125_v31 }
 0x2e9   :  { %v127_v32 = vpop.xlane.xlu1 %126 }
 0x2ea   :  { %v128_v33 = vrot.slane %v127_v32, 4 }
 0x2ec   :  { %v129_v34 = vadd.f32 %v128_v33, %v127_v32 }
 0x2ee   :  { %v130_v35 = vrot.slane %v129_v34, 2 }
 0x2f0   :  { %v131_v36 = vadd.f32 %v130_v35, %v129_v34 }
 0x2f2   :  { %v132_v37 = vrot.slane %v131_v36, 1 }
 0x2f4   :  { %v133_v38 = vadd.f32 %v132_v37, %v131_v36 }
 0x2f6   :  { %265 = vpush %v133_v38 }
 0x327   :  { %s266_s1 = spop %265 }
 0x328   :  { %v135_v39 = vstv %s266_s1 }
 0x329   :  { %277 = vrsqrt.f32 %v135_v39  ;;  %vm138_vm7 = vcmp.eq.f32.partialorder %v135_v39, inf  ;;  %v141_v42 = vand.u32 2147483648, %v135_v39  ;;  %vm140_vm8 = vcmp.eq.f32.partialorder %v135_v39, 0.0 }
 0x333   :  { %v278_v40 = vpop.eup %277 }
 0x334   :  { %v137_v41 = vmul.f32 %v278_v40, %v135_v39 }
 0x336   :  { %v139_v43 = vsel %vm138_vm7, %v135_v39, %v137_v41 }
 0x337   :  { %v142_v44 = vsel %vm140_vm8, %v141_v42, %v139_v43 }
 0x338   :  { %v143_v45 = vadd.f32 1e-12, %v142_v44 }
 0x33a   :  { %279 = vrcp.f32 %v143_v45 }
 0x344   :  { %v280_v46 = vpop.eup %279 }
 0x345   :  { %v145_v47 = vmul.f32 %v280_v46, %v122_v29 }
 0x347   :  { %146 = vxpose.xlu1.b32.start.end [1/1] (short) (narrow) %v145_v47, 8 }
 0x3c7   :  { %v162_v48 = vpop.trf.xlu1 }
 0x3c8   :  { %226 = vst.msk [vmem:[#allocation4] sm:$0x1] %vm225_vm9, %v162_v48  ;;  %178 = vxpose.xlu0.b32.start.end [1/1] (short) (narrow) %v162_v48, 8 }
 0x448   :  { %v194_v49 = vpop.trf.xlu0 }
 0x449   :  { %v210_v50 = vmul.f32 %v194_v49, %v122_v29 }
 0x44b   :  { %v211_v51 = vsel %vm124_vm6, %v210_v50, 0.0 }
 0x44c   :  { %212 = vadd.xlane.f32.xlu0 %v211_v51 }
 0x44d   :  { %294 = shalt.err (!%p291_p4)
}
 0x44e   :  { %s295_s22 = scalar_lea.hbm %s390_s3, 16 }
 0x44f   :  { %p296_p5 = scmp.ne.s32.totalorder %s390_s3, %s295_s22  ;;  %p299_p6 = scmp.lt.u32.totalorder %s295_s22, %s390_s3 }
 0x451   :  { %p301_p7 = pnand %p299_p6, %p296_p5 }
 0x453   :  { %304 = shalt.err (!%p301_p7)
}
 0x454   :  { %246 = dma.vmem_to_hbm [thread:$0]  %s244_s17, 16, %s390_s3, [#allocation5]   ;;  %vm223_vm10 = vcmask 0  }
 0x455   :  { %s334_s30 = smov [#allocation2]  }
 0x456   :  { %s233_s4 = sshll.u32 %s334_s30, 4  ;;  %s234_s4 = int_to_ptr.vmem [resolvable:$true] %s233_s4 }
 0x457   :  { %s305_s5 = scalar_lea.vmem %s234_s4, 16  ;;  %s309_s3 = scalar_lea.vmem %s234_s4, 32 }
 0x458   :  { %p306_p8 = scmp.ne.s32.totalorder %s234_s4, %s305_s5  ;;  %p310_p9 = scmp.lt.s32.totalorder %s234_s4, %s234_s4 }
 0x459   :  { %p311_p10 = scmp.lt.s32.totalorder %s309_s3, %s305_s5 }
 0x45b   :  { %p312_p11 = por %p311_p10, %p310_p9 }
 0x45d   :  { %p313_p12 = pnand %p312_p11, %p306_p8 }
 0x4d9   :  { %v213_v52 = vpop.xlane.xlu0 %212 }
 0x4da   :  { %v214_v53 = vrot.slane %v213_v52, 4 }
 0x4dc   :  { %v215_v54 = vadd.f32 %v214_v53, %v213_v52 }
 0x4de   :  { %v216_v55 = vrot.slane %v215_v54, 2 }
 0x4e0   :  { %v217_v56 = vadd.f32 %v216_v55, %v215_v54 }
 0x4e2   :  { %v218_v57 = vrot.slane %v217_v56, 1 }
 0x4e4   :  { %v219_v58 = vadd.f32 %v218_v57, %v217_v56 }
 0x4e6   :  { %267 = vpush %v219_v58 }
 0x517   :  { %s268_s29 = spop %267 }
 0x518   :  { %v221_v59 = vstv %s268_s29 }
 0x519   :  { %281 = vrcp.f32 %v221_v59 }
 0x523   :  { %v282_v60 = vpop.eup %281 }
 0x524   :  { %224 = vst.msk [vmem:[#allocation2] sm:$0x1] %vm223_vm10, %v282_v60 }
 0x525   :  { %316 = shalt.err (!%p313_p12)
}
 0x526   :  { %s317_s8 = scalar_lea.hbm %s389_s2, 16 }
 0x527   :  { %p318_p13 = scmp.ne.s32.totalorder %s389_s2, %s317_s8  ;;  %p321_p0 = scmp.lt.u32.totalorder %s317_s8, %s389_s2 }
 0x529   :  { %p323_p1 = pnand %p321_p0, %p318_p13 }
 0x52b   :  { %326 = shalt.err (!%p323_p1)
}
 0x52c   :  { %236 = dma.vmem_to_hbm [thread:$0]  %s234_s4, 16, %s389_s2, [#allocation3]  }
 0x52d   :  { %327 = dma.done.wait [#allocation3], 16  }
 0x52e   :  { %328 = vsyncadd [#allocation3], 4294967280 }
 0x52f   :  { %329 = dma.done.wait [#allocation5], 16  }
 0x530   :  { %330 = vsyncadd [#allocation5], 4294967280 }
 0x531   :  { %253 = vsyncpa [#allocation3], 1 }
 0x532   :  { %254 = vsyncpa [#allocation5], 1 }

// kernel: spectral_norm_conv2d.3
= control target key start
LH: loop header
LB: loop body
LE: loop exit
PB: predicated region body
PF: predicated region fallthrough
CT: control target
= control target key end

     0   :  { %s3758_s17 = smov 0   ;;  %s3760_s18 = smov 0   ;;  %s5011_s0 = inlined_call_operand.<no memory space> [shape: f32[1], index: 0, kind: input, shape index: {}]   ;;  %s5012_s1 = inlined_call_operand.vmem [shape: bf16[2,326,4], index: 1, kind: input, shape index: {}]   ;;  %s5013_s2 = inlined_call_operand.vmem [shape: bf16[36,128], index: 2, kind: input, shape index: {}]   ;;  %s5014_s3 = inlined_call_operand.vmem [shape: f32[1,128], index: 3, kind: input, shape index: {}]   ;;  %s5015_s4 = inlined_call_operand.vmem [shape: f32[2,288,128], index: 4, kind: output, shape index: {}]  }
   0x1   :  { %9 = sst [smem:[#allocation3]] %s5011_s0  ;;  %s3762_s19 = smov 0  }
   0x2 LB: > { %s27_s0 = sadd.s32 1, %s3716_s18  ;;  %p3223_p0 = scmp.ge.s32.totalorder %s3720_s19, 1  ;;  %s3720_s19 = sphi %s3762_s19, %s15_s19   ;;  %s3716_s18 = sphi %s3760_s18, %s5019_s18   ;;  %s3712_s17 = sphi %s3758_s17, %s5018_s17  }
   0x3   : > { %p29_p1 = scmp.ge.s32.totalorder %s27_s0, 2  ;;  %p194_p2 = scmp.lt.s32.totalorder %s3720_s19, 3 }
   0x5   : > { %s5021_s0 = smov (%p29_p1, %s27_s0), 0  ;;  %p195_p3 = pnand %p3223_p0, %p194_p2 }
   0x6   : > { %p230_p4 = scmp.lt.s32.totalorder (!%p195_p3), %s3712_s17, 1  ;;  %vm900_vm0 = vcmask (!%p195_p3), 1046528   ;;  %vm1755_vm1 = vcmask (!%p195_p3), 1045504   ;;  %s3722_s24 = smov (!%p195_p3), 12   ;;  %vm548_vm2 = vsmask.f32 (!%p195_p3), 7424 }
   0x7   : > { %198 = sbr.rel (%p195_p3) target bundleno = 650 (0x28a), region = 36  ;;  %s3723_s25 = smov (!%p195_p3), 8   ;;  %vm1381_vm3 = vsmask.f32 (!%p195_p3), 6400  ;;  %vm2236_vm4 = vsmask.f32 (!%p195_p3), 5376 }
   0x8   : > { %s3724_s26 = smov (!%p195_p3), 20   ;;  %s3725_s27 = smov (!%p195_p3), 4   ;;  %vm2610_vm5 = vcmask (!%p195_p3), 1044480   ;;  %vm399_vm6 = vcmask (!%p195_p3), 31744   ;;  %vm2814_vm7 = vcmask (!%p195_p3), 1041408   ;;  %vm751_vm8 = vcmask (!%p195_p3), 64544  }
   0x9   : > { %s3726_s28 = smov (!%p195_p3), 16   ;;  %s3727_s29 = smov (!%p195_p3), 24   ;;  %vm992_vm9 = vcmask (!%p195_p3), 97344   ;;  %vm1232_vm10 = vcmask (!%p195_p3), 130144   ;;  %vm1606_vm11 = vcmask (!%p195_p3), 162944   ;;  %vm1847_vm12 = vcmask (!%p195_p3), 195744  }
   0xa   : > { %s3728_s30 = smov (!%p195_p3), 28   ;;  %s3729_s5 = smov (!%p195_p3), 32   ;;  %vm2087_vm13 = vcmask (!%p195_p3), 228544   ;;  %vm2461_vm14 = vcmask (!%p195_p3), 261344   ;;  %vm2702_vm15 = vcmask (!%p195_p3), 294144  }
   0xb   : > { %s2995_s12 = sld [smem:[#allocation3]] (!%p195_p3) }
   0xe   : > { %s5023_s17 = smov (!%p230_p4, %s3712_s17), 1 }
   0xf   : > { %s3491_s20 = smul.u32 164, %s5023_s17 }
  0x10   : > { %s3492_s13 = smul.u32 288, %s5023_s17 }
  0x11   : > { %s3782_s23 = scalar_lea.vmem %s5012_s1, %s3491_s20 }
  0x12   : > { %v3525_v0 = vld [vmem:[%s3782_s23 + $0x8] sm:$0xfe]   ;;  %v3526_v1 = vld [vmem:[%s3782_s23 + $0x10] sm:$0xff]   ;;  %v3527_v4 = vld [vmem:[%s3782_s23] sm:$0xfe]   ;;  %s4873_s17 = scalar_lea.vmem %s5015_s4, %s3492_s13 }
  0x13   : > { %v1141_v2 = vrot.slane %v3525_v0, 1  ;;  %v1142_v3 = vrot.slane %v3526_v1, 1  ;;  %v3528_v5 = vld [vmem:[%s3782_s23 + $0x8] sm:$0xff]   ;;  %v901_v7 = vrot.slane %v3527_v4, 1  ;;  %v3530_v8 = vld [vmem:[%s3782_s23 + $0x10] sm:$0xff]   ;;  %v3796_v13 = vld [vmem:[%s3782_s23 + $0x18] sm:$0xff]  }
  0x14   : > { %v902_v9 = vrot.slane %v3528_v5, 1  ;;  %v3529_v10 = vld [vmem:[%s3782_s23 + $0x8] sm:$0xfc]   ;;  %v3793_v11 = vld [vmem:[%s3782_s23 + $0x10] sm:$0xff]   ;;  %v1757_v12 = vrot.slane %v3530_v8, 2  ;;  %v3533_v17 = vld [vmem:[%s3782_s23] sm:$0xff]  }
  0x15   : > { %v1143_v6 = vsel %vm900_vm0, %v1141_v2, %v1142_v3  ;;  %v1756_v15 = vrot.slane %v3529_v10, 2  ;;  %v904_v16 = vrot.slane %v3793_v11, 1  ;;  %v1144_v20 = vrot.slane %v3796_v13, 1  ;;  %v3534_v21 = vld [vmem:[%s3782_s23 + $0x8] sm:$0xff]   ;;  %v3810_v24 = vld [vmem:[%s3782_s23 + $0x18] sm:$0xff]   ;;  %v3813_v25 = vld [vmem:[%s3782_s23 + $0x10] sm:$0xff]  }
  0x16   : > { %1178 = vrot.lane.b32.xlu0 %v1143_v6, %s3722_s24  ;;  %v903_v14 = vsel %vm900_vm0, %v901_v7, %v902_v9  ;;  %v550_v22 = vshrl.u32 %v3533_v17, 16  ;;  %v552_v23 = vshll.u32 %v3533_v17, 16  ;;  %v557_v26 = vshll.u32 %v3534_v21, 16  ;;  %v3537_v31 = vld [vmem:[%s3782_s23 + $0x10] sm:$0xff]   ;;  %v3538_v34 = vld [vmem:[%s3782_s23 + $0x18] sm:$0xff]   ;;  %v3830_v46 = vld [vmem:[%s3782_s23 + $0x20] sm:$0xff]  }
  0x17   : > { %938 = vrot.lane.b32.xlu1 %v903_v14, %s3723_s25  ;;  %v1758_v18 = vsel %vm1755_vm1, %v1756_v15, %v1757_v12  ;;  %v905_v19 = vsel %vm900_vm0, %v902_v9, %v904_v16  ;;  %v561_v27 = vshrl.u32 %v3534_v21, 16  ;;  %v1759_v29 = vrot.slane %v3810_v24, 2  ;;  %v3540_v42 = vld [vmem:[%s3782_s23 + $0x18] sm:$0xff]   ;;  %v3539_v45 = vld [vmem:[%s3782_s23 + $0x8] sm:$0xfe]   ;;  %v3544_v1 = vld [vmem:[%s3782_s23 + $0x20] sm:$0xff]  }
  0x18   : > { %v554_v28 = vrot.slane %v552_v23, 1  ;;  %v565_v30 = vshll.u32 %v3813_v25, 16  ;;  %v1145_v32 = vsel %vm900_vm0, %v1142_v3, %v1144_v20  ;;  %v559_v33 = vrot.slane %v557_v26, 1  ;;  %v3543_v51 = vld [vmem:[%s3782_s23 + $0x18] sm:$0xff]   ;;  %v3542_v61 = vld [vmem:[%s3782_s23 + $0x10] sm:$0xfc]  }
  0x19   : > { %v1391_v37 = vshrl.u32 %v3537_v31, 16  ;;  %v1394_v39 = vshll.u32 %v3537_v31, 16  ;;  %v1400_v40 = vshrl.u32 %v3538_v34, 16  ;;  %v1403_v41 = vshll.u32 %v3538_v34, 16  ;;  %v3545_v4 = vld [vmem:[%s3782_s23 + $0x10] sm:$0xfc]  }
  0x1a   : > { %1793 = vrot.lane.b32.xlu0 %v1758_v18, %s3724_s26  ;;  %v555_v35 = vor.u32 %v554_v28, %v550_v22  ;;  %v3823_v36 = vrot.slane %v565_v30, 1  ;;  %v563_v38 = vor.u32 %v561_v27, %v559_v33  ;;  %v1760_v47 = vsel %vm1755_vm1, %v1757_v12, %v1759_v29  ;;  %v3546_v9 = vld [vmem:[%s3782_s23 + $0x18] sm:$0xff]   ;;  %v3547_v31 = vld [vmem:[%s3782_s23 + $0x10] sm:$0xf8]  }
  0x1b   : > { %940 = vrot.lane.b32.xlu1 %v905_v19, %s3723_s25  ;;  %v1393_v44 = vrot.slane %v1391_v37, 1  ;;  %v1396_v48 = vrot.slane %v1394_v39, 2  ;;  %v1402_v49 = vrot.slane %v1400_v40, 1  ;;  %v1405_v50 = vrot.slane %v1403_v41, 2  ;;  %v3548_v10 = vld [vmem:[%s3782_s23 + $0x18] sm:$0xff]   ;;  %v3550_v39 = vld [vmem:[%s3782_s23 + $0x50] sm:$0xff]  }
  0x1c   : > { %v560_v43 = vsel %vm548_vm2, %v555_v35, %v559_v33  ;;  %v568_v52 = vsel %vm548_vm2, %v563_v38, %v3823_v36  ;;  %v1383_v53 = vshrl.u32 %v3539_v45, 16  ;;  %v1386_v54 = vshll.u32 %v3539_v45, 16  ;;  %v3866_v35 = vld [vmem:[%s3782_s23 + $0x20] sm:$0xff]  }
  0x1d   : > { %v1397_v55 = vor.u32 %v1396_v48, %v1393_v44  ;;  %v3839_v56 = vor.u32 %v1405_v50, %v1402_v49  ;;  %v1997_v57 = vrot.slane %v3540_v42, 2  ;;  %v1999_v58 = vrot.slane %v3830_v46, 2 }
  0x1e   : > { %697 = vrot.lane.b32.xlu0 %v560_v43, %s3725_s27  ;;  %v1385_v59 = vrot.slane %v1383_v53, 1  ;;  %v1388_v60 = vrot.slane %v1386_v54, 2  ;;  %v1996_v0 = vrot.slane %v3542_v61, 2  ;;  %v2246_v2 = vshrl.u32 %v3543_v51, 16  ;;  %v3551_v43 = vld [vmem:[%s3782_s23 + $0x58] sm:$0xff]  }
  0x1f   : > { %1180 = vrot.lane.b32.xlu1 %v1145_v32, %s3722_s24  ;;  %v1407_v62 = vsel %vm1381_vm3, %v1397_v55, %v3839_v56  ;;  %v2249_v3 = vshll.u32 %v3543_v51, 16  ;;  %v2000_v6 = vsel %vm1755_vm1, %v1997_v57, %v1999_v58  ;;  %v2255_v12 = vshrl.u32 %v3544_v1, 16 }
  0x20   : > { %v1389_v63 = vor.u32 %v1388_v60, %v1385_v59  ;;  %v2248_v7 = vrot.slane %v2246_v2, 2  ;;  %v2258_v14 = vshll.u32 %v3544_v1, 16  ;;  %v2238_v15 = vshrl.u32 %v3545_v4, 16  ;;  %v3891_v59 = vld [vmem:[%s3782_s23 + $0x50] sm:$0xff]  }
  0x21   : > { %v2251_v8 = vrot.slane %v2249_v3, 3  ;;  %v2241_v17 = vshll.u32 %v3545_v4, 16  ;;  %v1998_v18 = vsel %vm1755_vm1, %v1996_v0, %v1997_v57  ;;  %v569_v21 = vshrl.u32 %v3813_v25, 16  ;;  %v3556_v3 = vld [vmem:[%s3782_s23 + $0x18] sm:$0xff]   ;;  %v3905_v4 = vld [vmem:[%s3782_s23 + $0x60] sm:$0xff]  }
  0x22   : > { %699 = vrot.lane.b32.xlu0 %v568_v52, %s3725_s27  ;;  %v1398_v5 = vsel %vm1381_vm3, %v1389_v63, %v1397_v55  ;;  %v573_v22 = vshll.u32 %v3546_v9, 16  ;;  %v2257_v23 = vrot.slane %v2255_v12, 2  ;;  %v2260_v26 = vrot.slane %v2258_v14, 3  ;;  %v3555_v63 = vld [vmem:[%s3782_s23 + $0x58] sm:$0xff]   ;;  %v3560_v14 = vld [vmem:[%s3782_s23 + $0x60] sm:$0xff]  }
  0x23   : > { %1795 = vrot.lane.b32.xlu1 %v1760_v47, %s3724_s26  ;;  %v2252_v19 = vor.u32 %v2251_v8, %v2248_v7  ;;  %v2240_v27 = vrot.slane %v2238_v15, 2  ;;  %v2243_v28 = vrot.slane %v2241_v17, 3  ;;  %v2612_v32 = vrot.slane %v3548_v10, 3  ;;  %v3879_v47 = vld [vmem:[%s3782_s23 + $0x20] sm:$0xff]  }
  0x24   : > { %v575_v30 = vrot.slane %v573_v22, 1  ;;  %v3862_v33 = vor.u32 %v2260_v26, %v2257_v23  ;;  %v571_v34 = vor.u32 %v569_v21, %v3823_v36  ;;  %v577_v37 = vshrl.u32 %v3546_v9, 16  ;;  %v3876_v36 = vld [vmem:[%s3782_s23 + $0x60] sm:$0xff]   ;;  %v3916_v9 = vld [vmem:[%s3782_s23 + $0x58] sm:$0xff]  }
  0x25   : > { %v2244_v25 = vor.u32 %v2243_v28, %v2240_v27  ;;  %v2611_v38 = vrot.slane %v3547_v31, 3  ;;  %v2614_v42 = vrot.slane %v3866_v35, 3  ;;  %v629_v44 = vshll.u32 %v3550_v39, 16  ;;  %v3565_v23 = vld [vmem:[%s3782_s23 + $0x60] sm:$0xff]   ;;  %v3936_v28 = vld [vmem:[%s3782_s23 + $0x68] sm:$0xff]  }
  0x26   : > { %1552 = vrot.lane.b32.xlu0 %v1398_v5, %s3726_s28  ;;  %v2262_v40 = vsel %vm2236_vm4, %v2252_v19, %v3862_v33  ;;  %v633_v45 = vshrl.u32 %v3550_v39, 16  ;;  %v576_v48 = vsel %vm548_vm2, %v571_v34, %v575_v30  ;;  %v637_v49 = vshll.u32 %v3551_v43, 16 }
  0x27   : > { %1554 = vrot.lane.b32.xlu1 %v1407_v62, %s3726_s28  ;;  %v2253_v41 = vsel %vm2236_vm4, %v2244_v25, %v2252_v19  ;;  %v641_v50 = vshrl.u32 %v3551_v43, 16  ;;  %v2613_v51 = vsel %vm2610_vm5, %v2611_v38, %v2612_v32  ;;  %v3884_v52 = vrot.slane %v629_v44, 1  ;;  %v3564_v19 = vld [vmem:[%s3782_s23 + $0x58] sm:$0xff]   ;;  %v3568_v43 = vld [vmem:[%s3782_s23 + $0x28] sm:$0xff]  }
  0x28   : > { %v645_v53 = vshll.u32 %v3876_v36, 16  ;;  %v581_v54 = vshll.u32 %v3879_v47, 16  ;;  %v639_v55 = vrot.slane %v637_v49, 1  ;;  %v2615_v60 = vsel %vm2610_vm5, %v2612_v32, %v2614_v42 }
  0x29   : > { %v635_v57 = vor.u32 %v633_v45, %v3884_v52  ;;  %v579_v1 = vor.u32 %v577_v37, %v575_v30  ;;  %v920_v5 = vrot.slane %v3891_v59, 1  ;;  %v922_v8 = vrot.slane %v3555_v63, 1  ;;  %v3939_v30 = vld [vmem:[%s3782_s23 + $0x28] sm:$0xff]   ;;  %v3566_v37 = vld [vmem:[%s3782_s23 + $0x20] sm:$0xff]  }
  0x2a   : > { %2033 = vrot.lane.b32.xlu0 %v1998_v18, %s3727_s29  ;;  %v643_v61 = vor.u32 %v641_v50, %v639_v55  ;;  %v3897_v62 = vrot.slane %v645_v53, 1  ;;  %v3901_v2 = vrot.slane %v581_v54, 1  ;;  %v906_v12 = vrot.slane %v3556_v3, 1  ;;  %v3561_v18 = vld [vmem:[%s3782_s23 + $0x20] sm:$0xff]  }
  0x2b   : > { %2035 = vrot.lane.b32.xlu1 %v2000_v6, %s3727_s29  ;;  %v640_v0 = vsel %vm548_vm2, %v635_v57, %v639_v55  ;;  %v3910_v6 = vld [vmem:[%s3782_s23 + $0x20] sm:$0xff]   ;;  %v924_v15 = vrot.slane %v3905_v4, 1  ;;  %v923_v21 = vsel %vm900_vm0, %v920_v5, %v922_v8  ;;  %v1160_v22 = vrot.slane %v3916_v9, 1  ;;  %v3604_v4 = vld [vmem:[%s3782_s23 + $0x78] sm:$0xff]  }
  0x2c   : > { %v648_v7 = vsel %vm548_vm2, %v643_v61, %v3897_v62  ;;  %v584_v10 = vsel %vm548_vm2, %v579_v1, %v3901_v2  ;;  %v908_v17 = vrot.slane %v3910_v6, 1  ;;  %v907_v26 = vsel %vm900_vm0, %v904_v16, %v906_v12  ;;  %v3567_v16 = vld [vmem:[%s3782_s23 + $0x68] sm:$0xff]  }
  0x2d   : > { %v1162_v27 = vrot.slane %v3560_v14, 1  ;;  %v1472_v31 = vshrl.u32 %v3564_v19, 16  ;;  %v1475_v32 = vshll.u32 %v3564_v19, 16  ;;  %v1481_v25 = vshrl.u32 %v3565_v23, 16  ;;  %v3570_v19 = vld [vmem:[%s3782_s23 + $0x60] sm:$0xff]  }
  0x2e   : > { %2407 = vrot.lane.b32.xlu0 %v2253_v41, %s3728_s30  ;;  %v1484_v34 = vshll.u32 %v3565_v23, 16  ;;  %v925_v11 = vsel %vm900_vm0, %v922_v8, %v924_v15  ;;  %v909_v38 = vsel %vm900_vm0, %v906_v12, %v908_v17  ;;  %v1146_v39 = vrot.slane %v3561_v18, 1  ;;  %v3973_v18 = vld [vmem:[%s3782_s23 + $0x58] sm:$0xff]  }
  0x2f   : > { %2409 = vrot.lane.b32.xlu1 %v2262_v40, %s3728_s30  ;;  %v1409_v40 = vshrl.u32 %v3566_v37, 16  ;;  %v1412_v41 = vshll.u32 %v3566_v37, 16  ;;  %v1163_v44 = vsel %vm900_vm0, %v1160_v22, %v1162_v27  ;;  %v1164_v45 = vrot.slane %v3936_v28, 1 }
  0x30   : > { %v1474_v49 = vrot.slane %v1472_v31, 1  ;;  %v1477_v50 = vrot.slane %v1475_v32, 2  ;;  %v1486_v53 = vrot.slane %v1484_v34, 2  ;;  %v1490_v57 = vshrl.u32 %v3567_v16, 16  ;;  %v3988_v32 = vld [vmem:[%s3782_s23 + $0x68] sm:$0xff]  }
  0x31   : > { %v1411_v54 = vrot.slane %v1409_v40, 1  ;;  %v1414_v55 = vrot.slane %v1412_v41, 2  ;;  %v1147_v61 = vsel %vm900_vm0, %v1144_v20, %v1146_v39  ;;  %v1418_v63 = vshrl.u32 %v3568_v43, 16  ;;  %v3993_v34 = vld [vmem:[%s3782_s23 + $0x28] sm:$0xff]   ;;  %v3579_v41 = vld [vmem:[%s3782_s23 + $0x60] sm:$0xff]  }
  0x32   : > { %2648 = vrot.lane.b32.xlu0 %v2613_v51, %s3729_s5  ;;  %v1483_v51 = vrot.slane %v1481_v25, 1  ;;  %v1165_v1 = vsel %vm900_vm0, %v1162_v27, %v1164_v45  ;;  %v3967_v3 = vor.u32 %v1477_v50, %v1474_v49  ;;  %v1492_v8 = vrot.slane %v1490_v57, 1  ;;  %v3576_v40 = vld [vmem:[%s3782_s23 + $0x28] sm:$0xff]  }
  0x33   : > { %701 = vrot.lane.b32.xlu1 %v576_v48, %s3725_s27  ;;  %v1148_v48 = vrot.slane %v3939_v30, 1  ;;  %v1420_v12 = vrot.slane %v1418_v63, 1  ;;  %v1775_v25 = vrot.slane %v3973_v18, 2  ;;  %v3580_v49 = vld [vmem:[%s3782_s23 + $0x68] sm:$0xff]   ;;  %v2327_v63 = vshrl.u32 %v3579_v41, 16 }
  0x35   : > { %v1149_v20 = vsel %vm900_vm0, %v1146_v39, %v1148_v48 }
  0x36   : > { %717 = vrot.lane.b32.xlu0 %v640_v0, %s3725_s27  ;;  %v1421_v0 = vshll.u32 %v3568_v43, 16  ;;  %v4008_v43 = vld [vmem:[%s3782_s23 + $0x70] sm:$0xff]  }
  0x37   : > { %2650 = vrot.lane.b32.xlu1 %v2615_v60, %s3729_s5  ;;  %v1493_v60 = vshll.u32 %v3567_v16, 16  ;;  %v3999_v16 = vld [vmem:[%s3782_s23 + $0x60] sm:$0xff]  }
  0x38   : > { %v1423_v14 = vrot.slane %v1421_v0, 2  ;;  %v2015_v57 = vrot.slane %v3999_v16, 2  ;;  %v2330_v0 = vshll.u32 %v3579_v41, 16 }
  0x39   : > { %v1495_v13 = vrot.slane %v1493_v60, 2 }
  0x3a   : > { %703 = vrot.lane.b32.xlu0 %v584_v10, %s3725_s27  ;;  %v1415_v10 = vor.u32 %v1414_v55, %v1411_v54  ;;  %v3985_v31 = vor.u32 %v1423_v14, %v1420_v12  ;;  %v3581_v54 = vld [vmem:[%s3782_s23 + $0x28] sm:$0xff]   ;;  %v1763_v55 = vrot.slane %v3993_v34, 2  ;;  %v3583_v14 = vld [vmem:[%s3782_s23 + $0x30] sm:$0xff]  }
  0x3b   : > { %719 = vrot.lane.b32.xlu1 %v648_v7, %s3725_s27  ;;  %v1487_v7 = vor.u32 %v1486_v53, %v1483_v51  ;;  %v3980_v23 = vor.u32 %v1495_v13, %v1492_v8  ;;  %v1779_v53 = vrot.slane %v3988_v32, 2  ;;  %v2339_v13 = vshll.u32 %v3580_v49, 16  ;;  %v4266_v32 = vld [vmem:[%s3782_s23 + $0x40] sm:$0xff]  }
  0x3c   : > { %v1416_v27 = vsel %vm1381_vm3, %v3839_v56, %v1415_v10  ;;  %v1777_v56 = vrot.slane %v3570_v19, 2  ;;  %v1425_v39 = vsel %vm1381_vm3, %v1415_v10, %v3985_v31  ;;  %v2267_v12 = vshll.u32 %v3581_v54, 16 }
  0x3d   : > { %v1497_v37 = vsel %vm1381_vm3, %v1487_v7, %v3980_v23  ;;  %v2329_v19 = vrot.slane %v2327_v63, 2  ;;  %v2273_v41 = vshrl.u32 %v3583_v14, 16 }
  0x3e   : > { %942 = vrot.lane.b32.xlu0 %v907_v26, %s3723_s25  ;;  %v3571_v26 = vld [vmem:[%s3782_s23 + $0x20] sm:$0xff]   ;;  %v1778_v50 = vsel %vm1755_vm1, %v1775_v25, %v1777_v56  ;;  %v1780_v8 = vsel %vm1755_vm1, %v1777_v56, %v1779_v53 }
  0x3f   : > { %958 = vrot.lane.b32.xlu1 %v923_v21, %s3723_s25  ;;  %v1488_v21 = vsel %vm1381_vm3, %v3967_v3, %v1487_v7  ;;  %v2336_v7 = vshrl.u32 %v3580_v49, 16  ;;  %v2276_v49 = vshll.u32 %v3583_v14, 16 }
  0x42   : > { %944 = vrot.lane.b32.xlu0 %v909_v38, %s3723_s25  ;;  %v3575_v38 = vld [vmem:[%s3782_s23 + $0x68] sm:$0xff]  }
  0x43   : > { %960 = vrot.lane.b32.xlu1 %v925_v11, %s3723_s25  ;;  %v1761_v11 = vrot.slane %v3571_v26, 2  ;;  %v2017_v60 = vrot.slane %v3575_v38, 2  ;;  %v2338_v38 = vrot.slane %v2336_v7, 2  ;;  %v2275_v7 = vrot.slane %v2273_v41, 2 }
  0x45   : > { %v1762_v51 = vsel %vm1755_vm1, %v1759_v29, %v1761_v11  ;;  %v3582_v29 = vld [vmem:[%s3782_s23 + $0x70] sm:$0xff]   ;;  %v1764_v10 = vsel %vm1755_vm1, %v1761_v11, %v1763_v55  ;;  %v2341_v11 = vrot.slane %v2339_v13, 3  ;;  %v3585_v13 = vld [vmem:[%s3782_s23 + $0x68] sm:$0xff]  }
  0x46   : > { %1182 = vrot.lane.b32.xlu0 %v1147_v61, %s3722_s24  ;;  %v2001_v61 = vrot.slane %v3576_v40, 2  ;;  %v2345_v26 = vshrl.u32 %v3582_v29, 16  ;;  %v2269_v40 = vrot.slane %v2267_v12, 3  ;;  %v3587_v12 = vld [vmem:[%s3782_s23 + $0x68] sm:$0xff]  }
  0x47   : > { %1198 = vrot.lane.b32.xlu1 %v1163_v44, %s3722_s24  ;;  %v4011_v44 = vld [vmem:[%s3782_s23 + $0x30] sm:$0xff]   ;;  %v657_v35 = vshrl.u32 %v3587_v12, 16 }
  0x48   : > { %v2003_v24 = vrot.slane %v4011_v44, 2  ;;  %v2002_v56 = vsel %vm1755_vm1, %v1999_v58, %v2001_v61 }
  0x4a   : > { %1184 = vrot.lane.b32.xlu0 %v1149_v20, %s3722_s24  ;;  %v2264_v20 = vshrl.u32 %v3581_v54, 16  ;;  %v2342_v54 = vor.u32 %v2341_v11, %v2338_v38  ;;  %v2004_v63 = vsel %vm1755_vm1, %v2001_v61, %v2003_v24 }
  0x4b   : > { %1200 = vrot.lane.b32.xlu1 %v1165_v1, %s3722_s24  ;;  %v2019_v1 = vrot.slane %v4008_v43, 2 }
  0x4d   : > { %v2020_v46 = vsel %vm1755_vm1, %v2017_v60, %v2019_v1 }
  0x4e   : > { %1556 = vrot.lane.b32.xlu0 %v1416_v27, %s3726_s28  ;;  %v2348_v27 = vshll.u32 %v3582_v29, 16  ;;  %v2278_v29 = vrot.slane %v2276_v49, 3 }
  0x4f   : > { %1572 = vrot.lane.b32.xlu1 %v1488_v21, %s3726_s28  ;;  %v2332_v21 = vrot.slane %v2330_v0, 3 }
  0x50   : > { %v4069_v14 = vor.u32 %v2278_v29, %v2275_v7  ;;  %v3606_v7 = vld [vmem:[%s3782_s23 + $0x8] sm:$0xff]  }
  0x51   : > { %v4050_v58 = vor.u32 %v2332_v21, %v2329_v19  ;;  %v3588_v19 = vld [vmem:[%s3782_s23 + $0x28] sm:$0xff]   ;;  %v649_v21 = vshrl.u32 %v3876_v36, 16  ;;  %v585_v36 = vshrl.u32 %v3879_v47, 16  ;;  %401 = vst.msk [vmem:[#allocation2 + $0x8] sm:$0xff] %vm399_vm6, %v3606_v7  ;;  %v4150_v7 = vld [vmem:[%s3782_s23 + $0x78] sm:$0xff]  }
  0x52   : > { %1558 = vrot.lane.b32.xlu0 %v1425_v39, %s3726_s28  ;;  %v2266_v39 = vrot.slane %v2264_v20, 2  ;;  %v3586_v20 = vld [vmem:[%s3782_s23 + $0x28] sm:$0xff]   ;;  %v589_v11 = vshll.u32 %v3588_v19, 16 }
  0x53   : > { %1574 = vrot.lane.b32.xlu1 %v1497_v37, %s3726_s28  ;;  %v2018_v37 = vsel %vm1755_vm1, %v2015_v57, %v2017_v60  ;;  %v2343_v60 = vsel %vm2236_vm4, %v4050_v58, %v2342_v54  ;;  %v651_v49 = vor.u32 %v649_v21, %v3897_v62 }
  0x54   : > { %v2270_v0 = vor.u32 %v2269_v40, %v2266_v39  ;;  %v3603_v39 = vld [vmem:[%s3782_s23] sm:$0xff]   ;;  %v4084_v40 = vld [vmem:[%s3782_s23 + $0x70] sm:$0xff]  }
  0x55   : > { %400 = vst.msk [vmem:[#allocation2] sm:$0xff] %vm399_vm6, %v3603_v39  ;;  %v2634_v62 = vrot.slane %v4084_v40, 3  ;;  %v3601_v39 = vld [vmem:[%s3782_s23 + $0x70] sm:$0xff]   ;;  %v4376_v40 = vld [vmem:[%s3782_s23 + $0x40] sm:$0xff]  }
  0x56   : > { %1797 = vrot.lane.b32.xlu0 %v1762_v51, %s3724_s26  ;;  %v2350_v51 = vrot.slane %v2348_v27, 3  ;;  %v2271_v61 = vsel %vm2236_vm4, %v3862_v33, %v2270_v0  ;;  %v2632_v27 = vrot.slane %v3585_v13, 3  ;;  %v2616_v33 = vrot.slane %v3586_v20, 3 }
  0x57   : > { %1813 = vrot.lane.b32.xlu1 %v1778_v50, %s3724_s26  ;;  %v2347_v50 = vrot.slane %v2345_v26, 2  ;;  %v2280_v38 = vsel %vm2236_vm4, %v2270_v0, %v4069_v14  ;;  %v4103_v0 = vld [vmem:[%s3782_s23 + $0x30] sm:$0xff]   ;;  %v593_v20 = vshrl.u32 %v3588_v19, 16 }
  0x58   : > { %v2617_v47 = vsel %vm2610_vm5, %v2614_v42, %v2616_v33 }
  0x5a   : > { %1799 = vrot.lane.b32.xlu0 %v1764_v10, %s3724_s26  ;;  %v4064_v10 = vor.u32 %v2350_v51, %v2347_v50  ;;  %v4092_v51 = vld [vmem:[%s3782_s23 + $0x30] sm:$0xff]  }
  0x5b   : > { %1815 = vrot.lane.b32.xlu1 %v1780_v8, %s3724_s26  ;;  %v4056_v8 = vld [vmem:[%s3782_s23 + $0x60] sm:$0xff]   ;;  %v2618_v13 = vrot.slane %v4092_v51, 3 }
  0x5c   : > { %v5016_v26 = vrot.slane %v4056_v8, 3 }
  0x5d   : > { %v2619_v19 = vsel %vm2610_vm5, %v2616_v33, %v2618_v13 }
  0x5e   : > { %2037 = vrot.lane.b32.xlu0 %v2002_v56, %s3727_s29  ;;  %v653_v56 = vshll.u32 %v3587_v12, 16  ;;  %v2633_v41 = vsel %vm2610_vm5, %v5016_v26, %v2632_v27  ;;  %v2635_v12 = vsel %vm2610_vm5, %v2632_v27, %v2634_v62  ;;  %v4134_v27 = vld [vmem:[%s3782_s23 + $0x30] sm:$0xff]   ;;  %v1508_v26 = vshrl.u32 %v3604_v4, 16 }
  0x5f   : > { %2053 = vrot.lane.b32.xlu1 %v2018_v37, %s3727_s29  ;;  %v2352_v37 = vsel %vm2236_vm4, %v2342_v54, %v4064_v10  ;;  %v587_v54 = vor.u32 %v585_v36, %v3901_v2  ;;  %v3594_v36 = vld [vmem:[%s3782_s23 + $0x28] sm:$0xff]  }
  0x60   : > { %v655_v50 = vrot.slane %v653_v56, 1 }
  0x62   : > { %2039 = vrot.lane.b32.xlu0 %v2004_v63, %s3727_s29  ;;  %v591_v63 = vrot.slane %v589_v11, 1  ;;  %v656_v29 = vsel %vm548_vm2, %v651_v49, %v655_v50  ;;  %v4130_v11 = vld [vmem:[%s3782_s23 + $0x70] sm:$0xff]  }
  0x63   : > { %2055 = vrot.lane.b32.xlu1 %v2020_v46, %s3727_s29  ;;  %v4095_v46 = vld [vmem:[%s3782_s23 + $0x70] sm:$0xff]  }
  0x64   : > { %v661_v42 = vshll.u32 %v4095_v46, 16  ;;  %v592_v2 = vsel %vm548_vm2, %v587_v54, %v591_v63  ;;  %v595_v56 = vor.u32 %v593_v20, %v591_v63  ;;  %v3615_v49 = vld [vmem:[%s3782_s23 + $0x10] sm:$0xff]   ;;  %v928_v20 = vrot.slane %v4130_v11, 1  ;;  %v4440_v11 = vld [vmem:[%s3782_s23 + $0x88] sm:$0xff]  }
  0x65   : > { %v4144_v54 = vld [vmem:[%s3782_s23 + $0x70] sm:$0xff]   ;;  %402 = vst.msk [vmem:[#allocation2 + $0x10] sm:$0xff] %vm399_vm6, %v3615_v49 }
  0x66   : > { %2411 = vrot.lane.b32.xlu0 %v2271_v61, %s3728_s30  ;;  %v659_v61 = vor.u32 %v657_v35, %v655_v50  ;;  %v4120_v21 = vrot.slane %v661_v42, 1  ;;  %v4147_v63 = vld [vmem:[%s3782_s23 + $0x30] sm:$0xff]   ;;  %v4156_v35 = vld [vmem:[%s3782_s23 + $0x38] sm:$0xff]  }
  0x67   : > { %2427 = vrot.lane.b32.xlu1 %v2343_v60, %s3728_s30  ;;  %v597_v60 = vshll.u32 %v4103_v0, 16  ;;  %v3602_v42 = vld [vmem:[%s3782_s23 + $0x30] sm:$0xff]   ;;  %v1150_v6 = vrot.slane %v4147_v63, 1  ;;  %v3605_v63 = vld [vmem:[%s3782_s23 + $0x38] sm:$0xff]  }
  0x68   : > { %v1430_v49 = vshll.u32 %v3602_v42, 16 }
  0x6a   : > { %2413 = vrot.lane.b32.xlu0 %v2280_v38, %s3728_s30  ;;  %v4126_v38 = vrot.slane %v597_v60, 1  ;;  %v3619_v60 = vld [vmem:[%s3782_s23 + $0x50] sm:$0xff]  }
  0x6b   : > { %2429 = vrot.lane.b32.xlu1 %v2352_v37, %s3728_s30  ;;  %v3593_v37 = vld [vmem:[%s3782_s23 + $0x68] sm:$0xff]   ;;  %410 = vst.msk [vmem:[#allocation2 + $0x50] sm:$0xff] %vm399_vm6, %v3619_v60 }
  0x6c   : > { %v926_v33 = vrot.slane %v3593_v37, 1  ;;  %v600_v50 = vsel %vm548_vm2, %v595_v56, %v4126_v38  ;;  %v912_v37 = vrot.slane %v4134_v27, 1  ;;  %v1502_v56 = vshll.u32 %v3601_v39, 16  ;;  %v3644_v27 = vld [vmem:[%s3782_s23 + $0x88] sm:$0xff]  }
  0x6e   : > { %2652 = vrot.lane.b32.xlu0 %v2617_v47, %s3729_s5  ;;  %v910_v47 = vrot.slane %v3594_v36, 1  ;;  %v1152_v36 = vrot.slane %v4156_v35, 1  ;;  %v1504_v60 = vrot.slane %v1502_v56, 2 }
  0x6f   : > { %2668 = vrot.lane.b32.xlu1 %v2633_v41, %s3729_s5  ;;  %v664_v41 = vsel %vm548_vm2, %v659_v61, %v4120_v21 }
  0x70   : > { %v911_v61 = vsel %vm900_vm0, %v908_v17, %v910_v47  ;;  %v1168_v17 = vrot.slane %v4150_v7, 1 }
  0x72   : > { %705 = vrot.lane.b32.xlu0 %v592_v2, %s3725_s27  ;;  %v927_v2 = vsel %vm900_vm0, %v924_v15, %v926_v33  ;;  %v1166_v15 = vrot.slane %v4144_v54, 1  ;;  %v913_v54 = vsel %vm900_vm0, %v910_v47, %v912_v37 }
  0x73   : > { %721 = vrot.lane.b32.xlu1 %v656_v29, %s3725_s27  ;;  %v3616_v29 = vld [vmem:[%s5013_s2] sm:$0xff]  }
  0x74   : > { %3441 = vmatprep.subr.bf16.mxu0 %v3616_v29  ;;  %3483 = vmatprep.subr.bf16.mxu1 %v3616_v29  ;;  %v1167_v47 = vsel %vm900_vm0, %v1164_v45, %v1166_v15  ;;  %v1169_v45 = vsel %vm900_vm0, %v1166_v15, %v1168_v17 }
  0x75   : > { %3442 = vmatpush3.bf16.msra.mxu0 %v3616_v29  ;;  %3486 = vmatpush3.bf16.msra.mxu1 %v3616_v29  ;;  %v3624_v29 = vld [vmem:[%s3782_s23 + $0x18] sm:$0xff]  }
  0x76   : > { %2654 = vrot.lane.b32.xlu0 %v2619_v19, %s3729_s5  ;;  %v1499_v19 = vshrl.u32 %v3601_v39, 16  ;;  %v929_v39 = vsel %vm900_vm0, %v926_v33, %v928_v20  ;;  %403 = vst.msk [vmem:[#allocation2 + $0x18] sm:$0xff] %vm399_vm6, %v3624_v29  ;;  %v3625_v33 = vld [vmem:[%s5013_s2 + $0x10] ss:$0 sps:$4 sm:$0x33]   ;;  %v1439_v29 = vshll.u32 %v3605_v63, 16 }
  0x77   : > { %2670 = vrot.lane.b32.xlu1 %v2635_v12, %s3729_s5  ;;  %v3620_v12 = vld [vmem:[%s5013_s2 + $0x8] sm:$0xff]   ;;  %v2816_v56 = vsel %vm2814_vm7, %v3625_v33, 0 }
  0x78   : > { %3443 = vmatprep.subr.bf16.mxu0 %v3620_v12  ;;  %3484 = vmatprep.subr.bf16.mxu1 %v3620_v12 }
  0x79   : > { %3444 = vmatpush3.bf16.msra.mxu0 %v3620_v12  ;;  %3487 = vmatpush3.bf16.msra.mxu1 %v3620_v12  ;;  %v1436_v12 = vshrl.u32 %v3605_v63, 16  ;;  %v1441_v63 = vrot.slane %v1439_v29, 2 }
  0x7a   : > { %707 = vrot.lane.b32.xlu0 %v600_v50, %s3725_s27  ;;  %v3623_v50 = vld [vmem:[%s3782_s23 + $0x58] sm:$0xff]   ;;  %3489 = vmatprep.subr.msk.bf16.mxu0 %vm2814_vm7, %v3625_v33 }
  0x7b   : > { %723 = vrot.lane.b32.xlu1 %v664_v41, %s3725_s27  ;;  %v1427_v41 = vshrl.u32 %v3602_v42, 16  ;;  %411 = vst.msk [vmem:[#allocation2 + $0x58] sm:$0xff] %vm399_vm6, %v3623_v50  ;;  %v1151_v50 = vsel %vm900_vm0, %v1148_v48, %v1150_v6  ;;  %3490 = vmatprep.subr.msk.bf16.mxu1 %vm2814_vm7, %v3625_v33  ;;  %vm2759_vm7 = vcmask 293888  }
  0x7d   : > { %v1429_v42 = vrot.slane %v1427_v41, 1  ;;  %3446 = vmatpush3.bf16.msra.mxu0 %v2816_v56  ;;  %3488 = vmatpush3.bf16.msra.mxu1 %v2816_v56  ;;  %v1153_v41 = vsel %vm900_vm0, %v1150_v6, %v1152_v36 }
  0x7e   : > { %946 = vrot.lane.b32.xlu0 %v911_v61, %s3723_s25  ;;  %v1432_v61 = vrot.slane %v1430_v49, 2 }
  0x7f   : > { %962 = vrot.lane.b32.xlu1 %v927_v2, %s3723_s25  ;;  %v1501_v2 = vrot.slane %v1499_v19, 1  ;;  %v1511_v19 = vshll.u32 %v3604_v4, 16  ;;  %v1510_v4 = vrot.slane %v1508_v26, 1 }
  0x80   : > { %v1433_v49 = vor.u32 %v1432_v61, %v1429_v42 }
  0x81   : > { %v1505_v30 = vor.u32 %v1504_v60, %v1501_v2  ;;  %v1513_v48 = vrot.slane %v1511_v19, 2  ;;  %v3607_v2 = vld [vmem:[%s3782_s23 + $0x70] sm:$0xff]   ;;  %v4234_v19 = vld [vmem:[%s3782_s23 + $0x78] sm:$0xff]  }
  0x82   : > { %948 = vrot.lane.b32.xlu0 %v913_v54, %s3723_s25  ;;  %v1438_v54 = vrot.slane %v1436_v12, 1  ;;  %v3608_v60 = vld [vmem:[%s3782_s23 + $0x30] sm:$0xff]   ;;  %v1434_v6 = vsel %vm1381_vm3, %v3985_v31, %v1433_v49  ;;  %v1781_v61 = vrot.slane %v3607_v2, 2  ;;  %v4239_v12 = vld [vmem:[%s3782_s23 + $0x38] sm:$0xff]  }
  0x83   : > { %964 = vrot.lane.b32.xlu1 %v929_v39, %s3723_s25  ;;  %v1506_v15 = vsel %vm1381_vm3, %v3980_v23, %v1505_v30  ;;  %v4221_v26 = vor.u32 %v1513_v48, %v1510_v4  ;;  %v3617_v4 = vld [vmem:[%s3782_s23 + $0x78] sm:$0xff]  }
  0x84   : > { %v4227_v42 = vor.u32 %v1441_v63, %v1438_v54  ;;  %v1782_v48 = vsel %vm1755_vm1, %v1779_v53, %v1781_v61  ;;  %v2354_v34 = vshrl.u32 %v3617_v4, 16 }
  0x85   : > { %v1515_v23 = vsel %vm1381_vm3, %v1505_v30, %v4221_v26  ;;  %v4247_v30 = vld [vmem:[%s3782_s23 + $0x38] sm:$0xff]  }
  0x86   : > { %1186 = vrot.lane.b32.xlu0 %v1151_v50, %s3722_s24  ;;  %v1443_v31 = vsel %vm1381_vm3, %v1433_v49, %v4227_v42  ;;  %v1765_v50 = vrot.slane %v3608_v60, 2  ;;  %v3618_v49 = vld [vmem:[%s3782_s23 + $0x38] sm:$0xff]   ;;  %v2357_v60 = vshll.u32 %v3617_v4, 16 }
  0x87   : > { %1202 = vrot.lane.b32.xlu1 %v1167_v47, %s3722_s24  ;;  %v2285_v4 = vshll.u32 %v3618_v49, 16 }
  0x88   : > { %v1179_v28 = vpop.permute.xlu0 %1178  ;;  %v1766_v63 = vsel %vm1755_vm1, %v1763_v55, %v1765_v50  ;;  %v3621_v55 = vld [vmem:[%s3782_s23 + $0x80] sm:$0xff]  }
  0x89   : > { %v939_v39 = vpop.permute.xlu1 %938 }
  0x8a   : > { %1188 = vrot.lane.b32.xlu0 %v1153_v41, %s3722_s24  ;;  %v1783_v41 = vrot.slane %v4234_v19, 2 }
  0x8b   : > { %1204 = vrot.lane.b32.xlu1 %v1169_v45, %s3722_s24  ;;  %v4242_v45 = vld [vmem:[%s3782_s23 + $0x78] sm:$0xff]  }
  0x8c   : > { %v4217_v33 = vpop.permute.xlu0 %1793  ;;  %v2021_v53 = vrot.slane %v4242_v45, 2  ;;  %v2005_v45 = vrot.slane %v4247_v30, 2  ;;  %v2363_v30 = vshrl.u32 %v3621_v55, 16 }
  0x8d   : > { %v941_v47 = vpop.permute.xlu1 %940 }
  0x8e   : > { %1560 = vrot.lane.b32.xlu0 %v1434_v6, %s3726_s28  ;;  %v2282_v6 = vshrl.u32 %v3618_v49, 16  ;;  %v2359_v49 = vrot.slane %v2357_v60, 3 }
  0x8f   : > { %1576 = vrot.lane.b32.xlu1 %v1506_v15, %s3726_s28  ;;  %v4263_v15 = vld [vmem:[%s3782_s23 + $0x80] sm:$0xff]  }
  0x90   : > { %v698_v29 = vpop.permute.xlu0 %697 }
  0x91   : > { %v1181_v56 = vpop.permute.xlu1 %1180  ;;  %752 = vst.msk [vmem:[#allocation2] sm:$0xff] %vm751_vm8, %v698_v29 }
  0x92   : > { %993 = vst.msk [vmem:[#allocation2] sm:$0xff] %vm992_vm9, %v939_v39  ;;  %1562 = vrot.lane.b32.xlu0 %v1443_v31, %s3726_s28  ;;  %v1767_v39 = vrot.slane %v4239_v12, 2 }
  0x93   : > { %1578 = vrot.lane.b32.xlu1 %v1515_v23, %s3726_s28  ;;  %1233 = vst.msk [vmem:[#allocation2] sm:$0xff] %vm1232_vm10, %v1179_v28  ;;  %v1784_v28 = vsel %vm1755_vm1, %v1781_v61, %v1783_v41  ;;  %v3622_v23 = vld [vmem:[%s3782_s23 + $0x40] sm:$0xff]   ;;  %v2007_v61 = vrot.slane %v4266_v32, 2 }
  0x94   : > { %v700_v2 = vpop.permute.xlu0 %699  ;;  %v1768_v29 = vsel %vm1755_vm1, %v1765_v50, %v1767_v39  ;;  %v2356_v50 = vrot.slane %v2354_v34, 2  ;;  %v2294_v43 = vshll.u32 %v3622_v23, 16 }
  0x95   : > { %v1796_v54 = vpop.permute.xlu1 %1795  ;;  %753 = vst.msk [vmem:[#allocation2 + $0x8] sm:$0xff] %vm751_vm8, %v700_v2  ;;  %v2366_v2 = vshll.u32 %v3621_v55, 16 }
  0x96   : > { %994 = vst.msk [vmem:[#allocation2 + $0x8] sm:$0xff] %vm992_vm9, %v941_v47  ;;  %1801 = vrot.lane.b32.xlu0 %v1766_v63, %s3724_s26  ;;  %v2284_v63 = vrot.slane %v2282_v6, 2  ;;  %v2008_v6 = vsel %vm1755_vm1, %v2005_v45, %v2007_v61 }
  0x97   : > { %1817 = vrot.lane.b32.xlu1 %v1782_v48, %s3724_s26  ;;  %1234 = vst.msk [vmem:[#allocation2 + $0x8] sm:$0xff] %vm1232_vm10, %v1181_v56  ;;  %v2023_v48 = vrot.slane %v4263_v15, 2  ;;  %v2022_v56 = vsel %vm1755_vm1, %v2019_v1, %v2021_v53  ;;  %v2368_v34 = vrot.slane %v2366_v2, 3 }
  0x98   : > { %v1553_v47 = vpop.permute.xlu0 %1552 }
  0x99   : > { %v1555_v31 = vpop.permute.xlu1 %1554  ;;  %1607 = vst.msk [vmem:[#allocation2] sm:$0xff] %vm1606_vm11, %v1553_v47  ;;  %v2024_v44 = vsel %vm1755_vm1, %v2021_v53, %v2023_v48  ;;  %v3654_v53 = vld [vmem:[%s3782_s23 + $0x60] sm:$0xff]  }
  0x9a   : > { %1608 = vst.msk [vmem:[#allocation2 + $0x8] sm:$0xff] %vm1606_vm11, %v1555_v31  ;;  %1803 = vrot.lane.b32.xlu0 %v1768_v29, %s3724_s26  ;;  %v2291_v31 = vshrl.u32 %v3622_v23, 16  ;;  %v2296_v29 = vrot.slane %v2294_v43, 3  ;;  %v665_v43 = vshrl.u32 %v4095_v46, 16  ;;  %v3661_v46 = vld [vmem:[%s3782_s23 + $0x28] sm:$0xff]  }
  0x9b   : > { %1819 = vrot.lane.b32.xlu1 %v1784_v28, %s3724_s26  ;;  %1849 = vst.msk [vmem:[#allocation2 + $0x8] sm:$0xff] %vm1847_vm12, %v1796_v54  ;;  %1848 = vst.msk [vmem:[#allocation2] sm:$0xff] %vm1847_vm12, %v4217_v33  ;;  %v2006_v54 = vsel %vm1755_vm1, %v2003_v24, %v2005_v45  ;;  %v2287_v28 = vrot.slane %v2285_v4, 3  ;;  %v2365_v33 = vrot.slane %v2363_v30, 2  ;;  %v2360_v24 = vor.u32 %v2359_v49, %v2356_v50  ;;  %v4309_v4 = vld [vmem:[%s3782_s23 + $0x78] sm:$0xff]   ;;  %v3655_v49 = vld [vmem:[%s3782_s23 + $0x20] sm:$0xff]  }
  0x9c   : > { %v2034_v1 = vpop.permute.xlu0 %2033  ;;  %v2293_v60 = vrot.slane %v2291_v31, 2  ;;  %v4313_v30 = vld [vmem:[%s3782_s23 + $0x78] sm:$0xff]   ;;  %412 = vst.msk [vmem:[#allocation2 + $0x60] sm:$0xff] %vm399_vm6, %v3654_v53  ;;  %404 = vst.msk [vmem:[#allocation2 + $0x20] sm:$0xff] %vm399_vm6, %v3655_v49  ;;  %v4367_v53 = vld [vmem:[%s3782_s23 + $0x80] sm:$0xff]  }
  0x9d   : > { %v2036_v47 = vpop.permute.xlu1 %2035  ;;  %2088 = vst.msk [vmem:[#allocation2] sm:$0xff] %vm2087_vm13, %v2034_v1  ;;  %v2288_v23 = vor.u32 %v2287_v28, %v2284_v63  ;;  %v4319_v50 = vld [vmem:[%s3782_s23 + $0x38] sm:$0xff]   ;;  %v2361_v45 = vsel %vm2236_vm4, %v4064_v10, %v2360_v24  ;;  %v4325_v63 = vor.u32 %v2368_v34, %v2365_v33  ;;  %v2636_v10 = vrot.slane %v4309_v4, 3 }
  0x9e   : > { %2089 = vst.msk [vmem:[#allocation2 + $0x8] sm:$0xff] %vm2087_vm13, %v2036_v47  ;;  %2041 = vrot.lane.b32.xlu0 %v2006_v54, %s3727_s29  ;;  %v4330_v47 = vor.u32 %v2296_v29, %v2293_v60  ;;  %v4333_v54 = vld [vmem:[%s3782_s23 + $0x38] sm:$0xff]   ;;  %v669_v1 = vshll.u32 %v4313_v30, 16  ;;  %v2620_v34 = vrot.slane %v4319_v50, 3  ;;  %v601_v60 = vshrl.u32 %v4103_v0, 16  ;;  %v3660_v29 = vld [vmem:[%s3782_s23 + $0x68] sm:$0xff]  }
  0x9f   : > { %2057 = vrot.lane.b32.xlu1 %v2022_v56, %s3727_s29  ;;  %v2289_v31 = vsel %vm2236_vm4, %v4069_v14, %v2288_v23  ;;  %v2370_v14 = vsel %vm2236_vm4, %v2360_v24, %v4325_v63  ;;  %v4352_v24 = vld [vmem:[%s3782_s23 + $0x80] sm:$0xff]   ;;  %v2637_v0 = vsel %vm2610_vm5, %v2634_v62, %v2636_v10  ;;  %v667_v4 = vor.u32 %v665_v43, %v4120_v21 }
  0xa0   : > { %v2408_v56 = vpop.permute.xlu0 %2407  ;;  %413 = vst.msk [vmem:[#allocation2 + $0x68] sm:$0xff] %vm399_vm6, %v3660_v29  ;;  %405 = vst.msk [vmem:[#allocation2 + $0x28] sm:$0xff] %vm399_vm6, %v3661_v46  ;;  %v2621_v49 = vsel %vm2610_vm5, %v2618_v13, %v2620_v34  ;;  %v673_v13 = vshrl.u32 %v4313_v30, 16 }
  0xa1   : > { %v2410_v55 = vpop.permute.xlu1 %2409  ;;  %2462 = vst.msk [vmem:[#allocation2] sm:$0xff] %vm2461_vm14, %v2408_v56  ;;  %v671_v56 = vrot.slane %v669_v1, 1 }
  0xa2   : > { %2463 = vst.msk [vmem:[#allocation2 + $0x8] sm:$0xff] %vm2461_vm14, %v2410_v55  ;;  %2043 = vrot.lane.b32.xlu0 %v2008_v6, %s3727_s29  ;;  %v605_v55 = vshll.u32 %v4333_v54, 16 }
  0xa3   : > { %2059 = vrot.lane.b32.xlu1 %v2024_v44, %s3727_s29  ;;  %v2298_v44 = vsel %vm2236_vm4, %v2288_v23, %v4330_v47  ;;  %v4359_v23 = vld [vmem:[%s3782_s23 + $0x40] sm:$0xff]   ;;  %v672_v51 = vsel %vm548_vm2, %v667_v4, %v671_v56 }
  0xa4   : > { %v2649_v28 = vpop.permute.xlu0 %2648  ;;  %v2622_v1 = vrot.slane %v4359_v23, 3 }
  0xa5   : > { %v702_v2 = vpop.permute.xlu1 %701  ;;  %2703 = vst.msk [vmem:[#allocation2] sm:$0xff] %vm2702_vm15, %v2649_v28 }
  0xa6   : > { %754 = vst.msk [vmem:[#allocation2 + $0x10] sm:$0xff] %vm751_vm8, %v702_v2  ;;  %2415 = vrot.lane.b32.xlu0 %v2289_v31, %s3728_s30  ;;  %v607_v2 = vrot.slane %v605_v55, 1  ;;  %v2638_v31 = vrot.slane %v4352_v24, 3  ;;  %v2623_v46 = vsel %vm2610_vm5, %v2620_v34, %v2622_v1 }
  0xa7   : > { %2431 = vrot.lane.b32.xlu1 %v2361_v45, %s3728_s30  ;;  %v603_v45 = vor.u32 %v601_v60, %v4126_v38  ;;  %v677_v38 = vshll.u32 %v4367_v53, 16 }
  0xa8   : > { %v718_v6 = vpop.permute.xlu0 %717  ;;  %v2639_v30 = vsel %vm2610_vm5, %v2636_v10, %v2638_v31 }
  0xa9   : > { %v2651_v33 = vpop.permute.xlu1 %2650  ;;  %762 = vst.msk [vmem:[#allocation2 + $0x50] sm:$0xff] %vm751_vm8, %v718_v6  ;;  %v608_v43 = vsel %vm548_vm2, %v603_v45, %v607_v2  ;;  %v4399_v55 = vrot.slane %v677_v38, 1  ;;  %v3634_v6 = vld [vmem:[%s3782_s23 + $0x78] sm:$0xff]  }
  0xaa   : > { %2704 = vst.msk [vmem:[#allocation2 + $0x8] sm:$0xff] %vm2702_vm15, %v2651_v33  ;;  %2417 = vrot.lane.b32.xlu0 %v2298_v44, %s3728_s30  ;;  %v609_v33 = vshrl.u32 %v4333_v54, 16  ;;  %v613_v44 = vshll.u32 %v4376_v40, 16  ;;  %v675_v54 = vor.u32 %v673_v13, %v671_v56  ;;  %v930_v34 = vrot.slane %v3634_v6, 1  ;;  %v4415_v56 = vld [vmem:[%s3782_s23 + $0x80] sm:$0xff]  }
  0xab   : > { %2433 = vrot.lane.b32.xlu1 %v2370_v14, %s3728_s30  ;;  %v3642_v13 = vld [vmem:[%s3782_s23 + $0x80] sm:$0xff]  }
  0xac   : > { %v704_v62 = vpop.permute.xlu0 %703  ;;  %v2721_v21 = vld [vmem:[#allocation2] sm:$0xff]  ;;  %v4405_v4 = vrot.slane %v613_v44, 1  ;;  %v680_v10 = vsel %vm548_vm2, %v675_v54, %v4399_v55  ;;  %v931_v38 = vsel %vm900_vm0, %v928_v20, %v930_v34  ;;  %v4443_v20 = vld [vmem:[%s3782_s23 + $0x48] sm:$0xff]   ;;  %v1517_v6 = vshrl.u32 %v3642_v13, 16 }
  0xad   : > { %v720_v50 = vpop.permute.xlu1 %719  ;;  %755 = vst.msk [vmem:[#allocation2 + $0x18] sm:$0xff] %vm751_vm8, %v704_v62  ;;  %3447 = vmatprep.mubr.msk.bf16.mxu0 %vm2759_vm7, %v2721_v21  ;;  %v4420_v21 = vld [vmem:[%s3782_s23 + $0x40] sm:$0xff]  }
  0xae   : > { %763 = vst.msk [vmem:[#allocation2 + $0x58] sm:$0xff] %vm751_vm8, %v720_v50  ;;  %2656 = vrot.lane.b32.xlu0 %v2621_v49, %s3729_s5  ;;  %v3635_v50 = vld [vmem:[%s3782_s23 + $0x38] sm:$0xff]  }
  0xaf   : > { %2672 = vrot.lane.b32.xlu1 %v2637_v0, %s3729_s5  ;;  %v611_v0 = vor.u32 %v609_v33, %v607_v2  ;;  %v914_v62 = vrot.slane %v3635_v50, 1 }
  0xb0   : > { %v943_v60 = vpop.permute.xlu0 %942 }
  0xb1   : > { %v959_v28 = vpop.permute.xlu1 %958  ;;  %v2722_v14 = vld [vmem:[#allocation2 + $0x8] sm:$0xff]  ;;  %995 = vst.msk [vmem:[#allocation2 + $0x10] sm:$0xff] %vm992_vm9, %v943_v60  ;;  %v616_v2 = vsel %vm548_vm2, %v611_v0, %v4405_v4  ;;  %v915_v44 = vsel %vm900_vm0, %v912_v37, %v914_v62  ;;  %v916_v60 = vrot.slane %v4420_v21, 1  ;;  %v3677_v21 = vld [vmem:[%s3782_s23 + $0x98] ss:$0 sps:$4 sm:$0x33]  }
  0xb2   : > { %1003 = vst.msk [vmem:[#allocation2 + $0x50] sm:$0xff] %vm992_vm9, %v959_v28  ;;  %3448 = vmatmul.mubr.msk.bf16.vlgmr.msra.gmra.mrb[0].mxu0 %vm2759_vm7, %v2722_v14  ;;  %709 = vrot.lane.b32.xlu0 %v608_v43, %s3725_s27  ;;  %v932_v28 = vrot.slane %v4415_v56, 1  ;;  %v3638_v14 = vld [vmem:[%s3782_s23 + $0x80] sm:$0xff]  }
  0xb3   : > { %725 = vrot.lane.b32.xlu1 %v672_v51, %s3725_s27  ;;  %v3643_v43 = vld [vmem:[%s3782_s23 + $0x40] sm:$0xff]  }
  0xb4   : > { %v945_v49 = vpop.permute.xlu0 %944  ;;  %v933_v37 = vsel %vm900_vm0, %v930_v34, %v932_v28  ;;  %v1445_v0 = vshrl.u32 %v3643_v43, 16 }
  0xb5   : > { %v961_v29 = vpop.permute.xlu1 %960  ;;  %996 = vst.msk [vmem:[#allocation2 + $0x18] sm:$0xff] %vm992_vm9, %v945_v49  ;;  %v917_v49 = vsel %vm900_vm0, %v914_v62, %v916_v60 }
  0xb6   : > { %1004 = vst.msk [vmem:[#allocation2 + $0x58] sm:$0xff] %vm992_vm9, %v961_v29  ;;  %2658 = vrot.lane.b32.xlu0 %v2623_v46, %s3729_s5  ;;  %v1520_v29 = vshll.u32 %v3642_v13, 16  ;;  %v1170_v46 = vrot.slane %v3638_v14, 1  ;;  %v1172_v13 = vrot.slane %v4440_v11, 1  ;;  %v1526_v14 = vshrl.u32 %v3644_v27, 16 }
  0xb7   : > { %2674 = vrot.lane.b32.xlu1 %v2639_v30, %s3729_s5  ;;  %v3639_v30 = vld [vmem:[%s3782_s23 + $0x40] sm:$0xff]  }
  0xb8   : > { %v1183_v51 = vpop.permute.xlu0 %1182  ;;  %v1522_v34 = vrot.slane %v1520_v29, 2  ;;  %v1171_v62 = vsel %vm900_vm0, %v1168_v17, %v1170_v46  ;;  %v1173_v7 = vsel %vm900_vm0, %v1170_v46, %v1172_v13  ;;  %v1528_v17 = vrot.slane %v1526_v14, 1 }
  0xb9   : > { %v1199_v45 = vpop.permute.xlu1 %1198  ;;  %1235 = vst.msk [vmem:[#allocation2 + $0x10] sm:$0xff] %vm1232_vm10, %v1183_v51 }
  0xba   : > { %1243 = vst.msk [vmem:[#allocation2 + $0x50] sm:$0xff] %vm1232_vm10, %v1199_v45  ;;  %711 = vrot.lane.b32.xlu0 %v616_v2, %s3725_s27  ;;  %v1448_v45 = vshll.u32 %v3643_v43, 16  ;;  %v3645_v2 = vld [vmem:[%s3782_s23 + $0x48] sm:$0xff]   ;;  %v1447_v43 = vrot.slane %v1445_v0, 1 }
  0xbb   : > { %727 = vrot.lane.b32.xlu1 %v680_v10, %s3725_s27  ;;  %v1154_v10 = vrot.slane %v3639_v30, 1  ;;  %v1529_v30 = vshll.u32 %v3644_v27, 16 }
  0xbc   : > { %v1185_v54 = vpop.permute.xlu0 %1184  ;;  %v1450_v29 = vrot.slane %v1448_v45, 2 }
  0xbd   : > { %v1201_v33 = vpop.permute.xlu1 %1200  ;;  %1236 = vst.msk [vmem:[#allocation2 + $0x18] sm:$0xff] %vm1232_vm10, %v1185_v54 }
  0xbe   : > { %1244 = vst.msk [vmem:[#allocation2 + $0x58] sm:$0xff] %vm1232_vm10, %v1201_v33  ;;  %950 = vrot.lane.b32.xlu0 %v915_v44, %s3723_s25  ;;  %v1519_v33 = vrot.slane %v1517_v6, 1  ;;  %v3684_v44 = vld [vmem:[%s3782_s23 + $0x70] sm:$0xff]   ;;  %v1155_v6 = vsel %vm900_vm0, %v1152_v36, %v1154_v10  ;;  %v1531_v36 = vrot.slane %v1529_v30, 2  ;;  %v1451_v45 = vor.u32 %v1450_v29, %v1447_v43 }
  0xbf   : > { %966 = vrot.lane.b32.xlu1 %v931_v38, %s3723_s25  ;;  %v1156_v38 = vrot.slane %v4443_v20, 1  ;;  %414 = vst.msk [vmem:[#allocation2 + $0x70] sm:$0xff] %vm399_vm6, %v3684_v44 }
  0xc0   : > { %v1557_v51 = vpop.permute.xlu0 %1556  ;;  %v1523_v35 = vor.u32 %v1522_v34, %v1519_v33  ;;  %v4489_v33 = vor.u32 %v1531_v36, %v1528_v17  ;;  %v3647_v34 = vld [vmem:[%s3782_s23 + $0x40] sm:$0xff]   ;;  %v1452_v43 = vsel %vm1381_vm3, %v4227_v42, %v1451_v45  ;;  %v3650_v36 = vld [vmem:[%s3782_s23 + $0x88] sm:$0xff]  }
  0xc1   : > { %v1573_v50 = vpop.permute.xlu1 %1572  ;;  %1609 = vst.msk [vmem:[#allocation2 + $0x10] sm:$0xff] %vm1606_vm11, %v1557_v51  ;;  %v1457_v51 = vshll.u32 %v3645_v2, 16  ;;  %v1157_v0 = vsel %vm900_vm0, %v1154_v10, %v1156_v38  ;;  %v3646_v10 = vld [vmem:[%s3782_s23 + $0x80] sm:$0xff]   ;;  %v2025_v19 = vrot.slane %v3650_v36, 2 }
  0xc2   : > { %1617 = vst.msk [vmem:[#allocation2 + $0x50] sm:$0xff] %vm1606_vm11, %v1573_v50  ;;  %952 = vrot.lane.b32.xlu0 %v917_v49, %s3723_s25  ;;  %v1454_v50 = vshrl.u32 %v3645_v2, 16  ;;  %v1524_v46 = vsel %vm1381_vm3, %v4221_v26, %v1523_v35  ;;  %v1533_v26 = vsel %vm1381_vm3, %v1523_v35, %v4489_v33  ;;  %v1785_v42 = vrot.slane %v3646_v10, 2  ;;  %v3651_v35 = vld [vmem:[%s3782_s23 + $0x48] sm:$0xff]   ;;  %v4534_v10 = vld [vmem:[%s3782_s23 + $0x90] sm:$0xff]  }
  0xc3   : > { %968 = vrot.lane.b32.xlu1 %v933_v37, %s3723_s25  ;;  %v3685_v37 = vld [vmem:[%s3782_s23 + $0x30] sm:$0xff]   ;;  %v1459_v44 = vrot.slane %v1457_v51, 2 }
  0xc4   : > { %v1559_v49 = vpop.permute.xlu0 %1558  ;;  %406 = vst.msk [vmem:[#allocation2 + $0x30] sm:$0xff] %vm399_vm6, %v3685_v37  ;;  %v1456_v2 = vrot.slane %v1454_v50, 1  ;;  %v4507_v50 = vld [vmem:[%s3782_s23 + $0x88] sm:$0xff]  }
  0xc5   : > { %v1575_v54 = vpop.permute.xlu1 %1574  ;;  %1610 = vst.msk [vmem:[#allocation2 + $0x18] sm:$0xff] %vm1606_vm11, %v1559_v49  ;;  %v1769_v49 = vrot.slane %v3647_v34, 2  ;;  %v4537_v34 = vld [vmem:[%s3782_s23 + $0x50] sm:$0xff]  }
  0xc6   : > { %1618 = vst.msk [vmem:[#allocation2 + $0x58] sm:$0xff] %vm1606_vm11, %v1575_v54  ;;  %1190 = vrot.lane.b32.xlu0 %v1155_v6, %s3722_s24  ;;  %v3689_v54 = vld [vmem:[%s3782_s23 + $0x78] sm:$0xff]   ;;  %v4496_v30 = vor.u32 %v1459_v44, %v1456_v2 }
  0xc7   : > { %1206 = vrot.lane.b32.xlu1 %v1171_v62, %s3722_s24  ;;  %415 = vst.msk [vmem:[#allocation2 + $0x78] sm:$0xff] %vm399_vm6, %v3689_v54  ;;  %v3690_v6 = vld [vmem:[%s3782_s23 + $0x38] sm:$0xff]   ;;  %v1770_v44 = vsel %vm1755_vm1, %v1767_v39, %v1769_v49  ;;  %v3657_v54 = vld [vmem:[%s3782_s23 + $0x48] sm:$0xff]  }
  0xc8   : > { %v1798_v62 = vpop.permute.xlu0 %1797  ;;  %407 = vst.msk [vmem:[#allocation2 + $0x38] sm:$0xff] %vm399_vm6, %v3690_v6  ;;  %v1461_v37 = vsel %vm1381_vm3, %v1451_v45, %v4496_v30  ;;  %v3656_v45 = vld [vmem:[%s3782_s23 + $0x88] sm:$0xff]  }
  0xc9   : > { %v1814_v27 = vpop.permute.xlu1 %1813  ;;  %1850 = vst.msk [vmem:[#allocation2 + $0x10] sm:$0xff] %vm1847_vm12, %v1798_v62  ;;  %v2372_v39 = vshrl.u32 %v3656_v45, 16 }
  0xca   : > { %1858 = vst.msk [vmem:[#allocation2 + $0x50] sm:$0xff] %vm1847_vm12, %v1814_v27  ;;  %1192 = vrot.lane.b32.xlu0 %v1157_v0, %s3722_s24  ;;  %v1786_v27 = vsel %vm1755_vm1, %v1783_v41, %v1785_v42  ;;  %v1787_v0 = vrot.slane %v4507_v50, 2  ;;  %v2009_v41 = vrot.slane %v3651_v35, 2  ;;  %v2011_v35 = vrot.slane %v4537_v34, 2 }
  0xcb   : > { %1208 = vrot.lane.b32.xlu1 %v1173_v7, %s3722_s24  ;;  %v4512_v7 = vld [vmem:[%s3782_s23 + $0x48] sm:$0xff]  }
  0xcc   : > { %v1800_v29 = vpop.permute.xlu0 %1799  ;;  %v1771_v62 = vrot.slane %v4512_v7, 2  ;;  %v1788_v12 = vsel %vm1755_vm1, %v1785_v42, %v1787_v0  ;;  %v2026_v42 = vsel %vm1755_vm1, %v2023_v48, %v2025_v19  ;;  %v2010_v36 = vsel %vm1755_vm1, %v2007_v61, %v2009_v41  ;;  %v3688_v7 = vld [vmem:[%s3782_s23 + $0xa0] ss:$0 sps:$4 sm:$0x77]  }
  0xcd   : > { %v1816_v14 = vpop.permute.xlu1 %1815  ;;  %1851 = vst.msk [vmem:[#allocation2 + $0x18] sm:$0xff] %vm1847_vm12, %v1800_v29 }
  0xce   : > { %1859 = vst.msk [vmem:[#allocation2 + $0x58] sm:$0xff] %vm1847_vm12, %v1816_v14  ;;  %1564 = vrot.lane.b32.xlu0 %v1452_v43, %s3726_s28  ;;  %v2375_v14 = vshll.u32 %v3656_v45, 16  ;;  %v3658_v43 = vld [vmem:[%s3782_s23 + $0x90] sm:$0xff]   ;;  %v1772_v29 = vsel %vm1755_vm1, %v1769_v49, %v1771_v62  ;;  %v2027_v49 = vrot.slane %v4534_v10, 2 }
  0xcf   : > { %1580 = vrot.lane.b32.xlu1 %v1524_v46, %s3726_s28 }
  0xd0   : > { %v2038_v17 = vpop.permute.xlu0 %2037  ;;  %v2377_v45 = vrot.slane %v2375_v14, 3  ;;  %v2028_v48 = vsel %vm1755_vm1, %v2025_v19, %v2027_v49  ;;  %v4574_v19 = vld [vmem:[%s3782_s23 + $0x88] sm:$0xff]  }
  0xd1   : > { %v2054_v51 = vpop.permute.xlu1 %2053  ;;  %2090 = vst.msk [vmem:[#allocation2 + $0x10] sm:$0xff] %vm2087_vm13, %v2038_v17 }
  0xd2   : > { %2098 = vst.msk [vmem:[#allocation2 + $0x50] sm:$0xff] %vm2087_vm13, %v2054_v51  ;;  %1566 = vrot.lane.b32.xlu0 %v1461_v37, %s3726_s28  ;;  %v2303_v51 = vshll.u32 %v3657_v54, 16  ;;  %v3659_v37 = vld [vmem:[%s3782_s23 + $0x50] sm:$0xff]  }
  0xd3   : > { %1582 = vrot.lane.b32.xlu1 %v1533_v26, %s3726_s28  ;;  %v2300_v26 = vshrl.u32 %v3657_v54, 16  ;;  %v2309_v15 = vshrl.u32 %v3659_v37, 16 }
  0xd4   : > { %v2040_v46 = vpop.permute.xlu0 %2039 }
  0xd5   : > { %v2056_v2 = vpop.permute.xlu1 %2055  ;;  %2091 = vst.msk [vmem:[#allocation2 + $0x18] sm:$0xff] %vm2087_vm13, %v2040_v46  ;;  %v2302_v46 = vrot.slane %v2300_v26, 2 }
  0xd6   : > { %2099 = vst.msk [vmem:[#allocation2 + $0x58] sm:$0xff] %vm2087_vm13, %v2056_v2  ;;  %1805 = vrot.lane.b32.xlu0 %v1770_v44, %s3724_s26  ;;  %v2381_v2 = vshrl.u32 %v3658_v43, 16  ;;  %v2384_v44 = vshll.u32 %v3658_v43, 16 }
  0xd7   : > { %1821 = vrot.lane.b32.xlu1 %v1786_v27, %s3724_s26  ;;  %v2374_v27 = vrot.slane %v2372_v39, 2 }
  0xd8   : > { %v2412_v17 = vpop.permute.xlu0 %2411  ;;  %v2383_v39 = vrot.slane %v2381_v2, 2  ;;  %v2386_v14 = vrot.slane %v2384_v44, 3 }
  0xd9   : > { %v2428_v6 = vpop.permute.xlu1 %2427  ;;  %2464 = vst.msk [vmem:[#allocation2 + $0x10] sm:$0xff] %vm2461_vm14, %v2412_v17  ;;  %v2378_v61 = vor.u32 %v2377_v45, %v2374_v27  ;;  %v3694_v27 = vld [vmem:[%s3782_s23 + $0x80] sm:$0xff]  }
  0xda   : > { %2472 = vst.msk [vmem:[#allocation2 + $0x50] sm:$0xff] %vm2461_vm14, %v2428_v6  ;;  %1807 = vrot.lane.b32.xlu0 %v1772_v29, %s3724_s26  ;;  %v2312_v6 = vshll.u32 %v3659_v37, 16  ;;  %v2012_v29 = vsel %vm1755_vm1, %v2009_v41, %v2011_v35  ;;  %v4579_v41 = vor.u32 %v2386_v14, %v2383_v39  ;;  %v3695_v45 = vld [vmem:[%s3782_s23 + $0x40] sm:$0xff]  }
  0xdb   : > { %1823 = vrot.lane.b32.xlu1 %v1788_v12, %s3724_s26  ;;  %v2305_v12 = vrot.slane %v2303_v51, 3  ;;  %v2311_v51 = vrot.slane %v2309_v15, 2  ;;  %416 = vst.msk [vmem:[#allocation2 + $0x80] sm:$0xff] %vm399_vm6, %v3694_v27  ;;  %408 = vst.msk [vmem:[#allocation2 + $0x40] sm:$0xff] %vm399_vm6, %v3695_v45  ;;  %v3697_v27 = vld [vmem:[%s3782_s23 + $0x48] sm:$0xff]  }
  0xdc   : > { %v2414_v32 = vpop.permute.xlu0 %2413  ;;  %v2314_v37 = vrot.slane %v2312_v6, 3  ;;  %v681_v6 = vshrl.u32 %v4367_v53, 16  ;;  %409 = vst.msk [vmem:[#allocation2 + $0x48] sm:$0xff] %vm399_vm6, %v3697_v27 }
  0xdd   : > { %v2430_v54 = vpop.permute.xlu1 %2429  ;;  %2465 = vst.msk [vmem:[#allocation2 + $0x18] sm:$0xff] %vm2461_vm14, %v2414_v32  ;;  %v2306_v26 = vor.u32 %v2305_v12, %v2302_v46  ;;  %v4591_v46 = vld [vmem:[%s3782_s23 + $0x48] sm:$0xff]  }
  0xde   : > { %2473 = vst.msk [vmem:[#allocation2 + $0x58] sm:$0xff] %vm2461_vm14, %v2430_v54  ;;  %2045 = vrot.lane.b32.xlu0 %v2010_v36, %s3727_s29  ;;  %v4582_v36 = vld [vmem:[%s3782_s23 + $0x88] sm:$0xff]   ;;  %v4588_v54 = vor.u32 %v2314_v37, %v2311_v51  ;;  %v683_v37 = vor.u32 %v681_v6, %v4399_v55 }
  0xdf   : > { %2061 = vrot.lane.b32.xlu1 %v2026_v42, %s3727_s29  ;;  %v2379_v42 = vsel %vm2236_vm4, %v4325_v63, %v2378_v61  ;;  %v2307_v44 = vsel %vm2236_vm4, %v4330_v47, %v2306_v26  ;;  %v4594_v12 = vld [vmem:[%s3782_s23 + $0x48] sm:$0xff]   ;;  %v2388_v63 = vsel %vm2236_vm4, %v2378_v61, %v4579_v41  ;;  %v2640_v47 = vrot.slane %v4574_v19, 3  ;;  %v3668_v19 = vld [vmem:[%s3782_s23 + $0x90] ss:$0 sps:$4 sm:$0x11]  }
  0xe0   : > { %v2653_v17 = vpop.permute.xlu0 %2652  ;;  %v685_v32 = vshll.u32 %v4582_v36, 16  ;;  %v2316_v14 = vsel %vm2236_vm4, %v2306_v26, %v4588_v54  ;;  %v621_v61 = vshll.u32 %v4594_v12, 16  ;;  %v4618_v26 = vld [vmem:[%s3782_s23 + $0x90] sm:$0xff]   ;;  %v693_v55 = vshll.u32 %v3668_v19, 16 }
  0xe1   : > { %v2669_v43 = vpop.permute.xlu1 %2668  ;;  %2705 = vst.msk [vmem:[#allocation2 + $0x10] sm:$0xff] %vm2702_vm15, %v2653_v17 }
  0xe2   : > { %2713 = vst.msk [vmem:[#allocation2 + $0x50] sm:$0xff] %vm2702_vm15, %v2669_v43  ;;  %2047 = vrot.lane.b32.xlu0 %v2012_v29, %s3727_s29  ;;  %v2624_v43 = vrot.slane %v4591_v46, 3  ;;  %v617_v29 = vshrl.u32 %v4376_v40, 16  ;;  %v2641_v40 = vsel %vm2610_vm5, %v2638_v31, %v2640_v47  ;;  %v687_v17 = vrot.slane %v685_v32, 1 }
  0xe3   : > { %2063 = vrot.lane.b32.xlu1 %v2028_v48, %s3727_s29  ;;  %v623_v46 = vrot.slane %v621_v61, 1  ;;  %v2642_v31 = vrot.slane %v4618_v26, 3  ;;  %v3669_v61 = vld [vmem:[%s3782_s23 + $0x88] sm:$0xff]  }
  0xe4   : > { %v706_v15 = vpop.permute.xlu0 %705  ;;  %v688_v23 = vsel %vm548_vm2, %v683_v37, %v687_v17  ;;  %v3670_v37 = vld [vmem:[%s3782_s23 + $0x48] sm:$0xff]  }
  0xe5   : > { %v722_v2 = vpop.permute.xlu1 %721  ;;  %756 = vst.msk [vmem:[#allocation2 + $0x20] sm:$0xff] %vm751_vm8, %v706_v15  ;;  %v4633_v15 = vld [vmem:[%s3782_s23 + $0x50] sm:$0xff]  }
  0xe6   : > { %764 = vst.msk [vmem:[#allocation2 + $0x60] sm:$0xff] %vm751_vm8, %v722_v2  ;;  %2419 = vrot.lane.b32.xlu0 %v2307_v44, %s3728_s30  ;;  %v2625_v2 = vsel %vm2610_vm5, %v2622_v1, %v2624_v43  ;;  %v619_v44 = vor.u32 %v617_v29, %v4405_v4  ;;  %v689_v1 = vshrl.u32 %v4582_v36, 16  ;;  %v2626_v32 = vrot.slane %v4633_v15, 3 }
  0xe7   : > { %2435 = vrot.lane.b32.xlu1 %v2379_v42, %s3728_s30  ;;  %v3696_v42 = vld [vmem:[%s3782_s23 + $0x88] sm:$0xff]   ;;  %v2643_v36 = vsel %vm2610_vm5, %v2640_v47, %v2642_v31  ;;  %v695_v29 = vrot.slane %v693_v55, 1  ;;  %v3673_v55 = vld [vmem:[%s3782_s23 + $0x50] sm:$0xff]  }
  0xe8   : > { %v2655_v51 = vpop.permute.xlu0 %2654  ;;  %v2723_v53 = vld [vmem:[#allocation2 + $0x10] sm:$0xff]  ;;  %417 = vst.msk [vmem:[#allocation2 + $0x88] sm:$0xff] %vm399_vm6, %v3696_v42  ;;  %v624_v6 = vsel %vm548_vm2, %v619_v44, %v623_v46 }
  0xe9   : > { %v2671_v48 = vpop.permute.xlu1 %2670  ;;  %v2731_v39 = vld [vmem:[#allocation2 + $0x50] sm:$0xff]  ;;  %2706 = vst.msk [vmem:[#allocation2 + $0x18] sm:$0xff] %vm2702_vm15, %v2655_v51  ;;  %3451 = vmatprep.mubr.msk.bf16.mxu0 %vm2759_vm7, %v2723_v53  ;;  %v2627_v53 = vsel %vm2610_vm5, %v2624_v43, %v2626_v32 }
  0xea   : > { %2714 = vst.msk [vmem:[#allocation2 + $0x58] sm:$0xff] %vm2702_vm15, %v2671_v48  ;;  %3467 = vmatprep.mubr.msk.bf16.mxu1 %vm2759_vm7, %v2731_v39  ;;  %2421 = vrot.lane.b32.xlu0 %v2316_v14, %s3728_s30  ;;  %v625_v48 = vshrl.u32 %v4594_v12, 16  ;;  %v691_v12 = vor.u32 %v689_v1, %v687_v17  ;;  %v934_v17 = vrot.slane %v3669_v61, 1  ;;  %v3671_v42 = vld [vmem:[%s3782_s23 + $0x90] ss:$0 sps:$4 sm:$0x11]  }
  0xeb   : > { %2437 = vrot.lane.b32.xlu1 %v2388_v63, %s3728_s30  ;;  %v3672_v44 = vld [vmem:[%s3782_s23 + $0x90] sm:$0xff]  }
  0xec   : > { %v708_v24 = vpop.permute.xlu0 %707  ;;  %v696_v47 = vsel %vm548_vm2, %v691_v12, %v695_v29  ;;  %v1174_v56 = vrot.slane %v3672_v44, 1 }
  0xed   : > { %v724_v45 = vpop.permute.xlu1 %723  ;;  %757 = vst.msk [vmem:[#allocation2 + $0x28] sm:$0xff] %vm751_vm8, %v708_v24  ;;  %v936_v24 = vrot.slane %v3671_v42, 1 }
  0xee   : > { %765 = vst.msk [vmem:[#allocation2 + $0x68] sm:$0xff] %vm751_vm8, %v724_v45  ;;  %2660 = vrot.lane.b32.xlu0 %v2625_v2, %s3729_s5  ;;  %v918_v45 = vrot.slane %v3670_v37, 1  ;;  %v1547_v37 = vshll.u32 %v3677_v21, 16 }
  0xef   : > { %2676 = vrot.lane.b32.xlu1 %v2641_v40, %s3729_s5  ;;  %v627_v40 = vor.u32 %v625_v48, %v623_v46  ;;  %v935_v46 = vsel %vm900_vm0, %v932_v28, %v934_v17  ;;  %v937_v28 = vsel %vm900_vm0, %v934_v17, %v936_v24 }
  0xf0   : > { %v947_v39 = vpop.permute.xlu0 %946  ;;  %v2724_v14 = vld [vmem:[#allocation2 + $0x18] sm:$0xff]  ;;  %v919_v1 = vsel %vm900_vm0, %v916_v60, %v918_v45  ;;  %v921_v60 = vsel %vm900_vm0, %v918_v45, %v920_v5  ;;  %v1544_v5 = vshrl.u32 %v3677_v21, 16  ;;  %v1549_v20 = vrot.slane %v1547_v37, 2 }
  0xf1   : > { %v963_v4 = vpop.permute.xlu1 %962  ;;  %v2732_v63 = vld [vmem:[#allocation2 + $0x58] sm:$0xff]  ;;  %997 = vst.msk [vmem:[#allocation2 + $0x20] sm:$0xff] %vm992_vm9, %v947_v39  ;;  %3452 = vmatmul.mubr.msk.bf16.gmra.mrb[4].mxu0 %vm2759_vm7, %v2724_v14  ;;  %v632_v27 = vsel %vm548_vm2, %v627_v40, %v3884_v52 }
  0xf2   : > { %1005 = vst.msk [vmem:[#allocation2 + $0x60] sm:$0xff] %vm992_vm9, %v963_v4  ;;  %3468 = vmatmul.mubr.msk.bf16.vlgmr.msra.gmra.mrb[0].mxu1 %vm2759_vm7, %v2732_v63  ;;  %713 = vrot.lane.b32.xlu0 %v624_v6, %s3725_s27  ;;  %v3676_v4 = vld [vmem:[%s3782_s23 + $0x50] sm:$0xff]   ;;  %v3674_v6 = vld [vmem:[%s3782_s23 + $0x98] ss:$0 sps:$4 sm:$0x11]  }
  0xf3   : > { %729 = vrot.lane.b32.xlu1 %v688_v23, %s3725_s27  ;;  %v3675_v23 = vld [vmem:[%s3782_s23 + $0x90] sm:$0xff]   ;;  %v1463_v12 = vshrl.u32 %v3676_v4, 16  ;;  %v1466_v29 = vshll.u32 %v3676_v4, 16  ;;  %v3680_v4 = vld [vmem:[%s3782_s23 + $0x98] ss:$0 sps:$4 sm:$0x33]  }
  0xf4   : > { %v949_v19 = vpop.permute.xlu0 %948  ;;  %v1535_v48 = vshrl.u32 %v3675_v23, 16  ;;  %v1538_v39 = vshll.u32 %v3675_v23, 16  ;;  %v3678_v23 = vld [vmem:[%s3782_s23 + $0x90] sm:$0xff]   ;;  %v3686_v21 = vld [vmem:[%s3782_s23 + $0x98] sm:$0xff]  }
  0xf5   : > { %v965_v51 = vpop.permute.xlu1 %964  ;;  %998 = vst.msk [vmem:[#allocation2 + $0x28] sm:$0xff] %vm992_vm9, %v949_v19  ;;  %v1465_v17 = vrot.slane %v1463_v12, 1  ;;  %v1468_v42 = vrot.slane %v1466_v29, 2  ;;  %v3683_v29 = vld [vmem:[%s3782_s23 + $0xa0] ss:$0 sps:$4 sm:$0x33]  }
  0xf6   : > { %1006 = vst.msk [vmem:[#allocation2 + $0x68] sm:$0xff] %vm992_vm9, %v965_v51  ;;  %2662 = vrot.lane.b32.xlu0 %v2627_v53, %s3729_s5  ;;  %v1175_v51 = vsel %vm900_vm0, %v1172_v13, %v1174_v56  ;;  %v1176_v53 = vrot.slane %v3674_v6, 1  ;;  %v1537_v59 = vrot.slane %v1535_v48, 1  ;;  %v1540_v40 = vrot.slane %v1538_v39, 2 }
  0xf7   : > { %2678 = vrot.lane.b32.xlu1 %v2643_v36, %s3729_s5  ;;  %v1158_v36 = vrot.slane %v3673_v55, 1  ;;  %v1789_v55 = vrot.slane %v3678_v23, 2  ;;  %v1791_v39 = vrot.slane %v3680_v4, 2  ;;  %v3691_v23 = vld [vmem:[%s3782_s23 + $0x98] sm:$0xff]  }
  0xf8   : > { %v1187_v2 = vpop.permute.xlu0 %1186  ;;  %v1177_v11 = vsel %vm900_vm0, %v1174_v56, %v1176_v53  ;;  %v1541_v13 = vor.u32 %v1540_v40, %v1537_v59 }
  0xf9   : > { %v1203_v43 = vpop.permute.xlu1 %1202  ;;  %1237 = vst.msk [vmem:[#allocation2 + $0x20] sm:$0xff] %vm1232_vm10, %v1187_v2  ;;  %v1469_v2 = vor.u32 %v1468_v42, %v1465_v17  ;;  %v1790_v48 = vsel %vm1755_vm1, %v1787_v0, %v1789_v55  ;;  %v1792_v0 = vsel %vm1755_vm1, %v1789_v55, %v1791_v39  ;;  %v2402_v42 = vshll.u32 %v3688_v7, 16 }
  0xfa   : > { %1245 = vst.msk [vmem:[#allocation2 + $0x60] sm:$0xff] %vm1232_vm10, %v1203_v43  ;;  %715 = vrot.lane.b32.xlu0 %v632_v27, %s3725_s27  ;;  %v1546_v27 = vrot.slane %v1544_v5, 1 }
  0xfb   : > { %731 = vrot.lane.b32.xlu1 %v696_v47, %s3725_s27  ;;  %v1159_v47 = vsel %vm900_vm0, %v1156_v38, %v1158_v36  ;;  %v1161_v38 = vsel %vm900_vm0, %v1158_v36, %v1160_v22  ;;  %v1470_v9 = vsel %vm1381_vm3, %v4496_v30, %v1469_v2  ;;  %v3679_v22 = vld [vmem:[%s3782_s23 + $0x50] sm:$0xff]   ;;  %v1479_v30 = vsel %vm1381_vm3, %v1469_v2, %v3967_v3  ;;  %v3687_v36 = vld [vmem:[%s3782_s23 + $0x58] sm:$0xff]  }
  0xfc   : > { %v1189_v63 = vpop.permute.xlu0 %1188  ;;  %v1550_v24 = vor.u32 %v1549_v20, %v1546_v27  ;;  %v1773_v56 = vrot.slane %v3679_v22, 2  ;;  %v2318_v40 = vshrl.u32 %v3687_v36, 16  ;;  %v2321_v5 = vshll.u32 %v3687_v36, 16 }
  0xfd   : > { %v1205_v52 = vpop.permute.xlu1 %1204  ;;  %1238 = vst.msk [vmem:[#allocation2 + $0x28] sm:$0xff] %vm1232_vm10, %v1189_v63  ;;  %v2404_v34 = vrot.slane %v2402_v42, 3 }
  0xfe   : > { %1246 = vst.msk [vmem:[#allocation2 + $0x68] sm:$0xff] %vm1232_vm10, %v1205_v52  ;;  %954 = vrot.lane.b32.xlu0 %v919_v1, %s3723_s25  ;;  %v2323_v27 = vrot.slane %v2321_v5, 3 }
  0xff   : > { %970 = vrot.lane.b32.xlu1 %v935_v46, %s3723_s25  ;;  %v1542_v46 = vsel %vm1381_vm3, %v4489_v33, %v1541_v13  ;;  %v1551_v33 = vsel %vm1381_vm3, %v1541_v13, %v1550_v24  ;;  %v2320_v13 = vrot.slane %v2318_v40, 2 }
 0x100   : > { %v1561_v61 = vpop.permute.xlu0 %1560 }
 0x101   : > { %v1577_v14 = vpop.permute.xlu1 %1576  ;;  %1611 = vst.msk [vmem:[#allocation2 + $0x20] sm:$0xff] %vm1606_vm11, %v1561_v61  ;;  %v2390_v61 = vshrl.u32 %v3686_v21, 16  ;;  %v2324_v2 = vor.u32 %v2323_v27, %v2320_v13 }
 0x102   : > { %1619 = vst.msk [vmem:[#allocation2 + $0x60] sm:$0xff] %vm1606_vm11, %v1577_v14  ;;  %956 = vrot.lane.b32.xlu0 %v921_v60, %s3723_s25  ;;  %v1774_v14 = vsel %vm1755_vm1, %v1771_v62, %v1773_v56  ;;  %v3682_v60 = vld [vmem:[%s3782_s23 + $0x58] sm:$0xff]   ;;  %v1776_v62 = vsel %vm1755_vm1, %v1773_v56, %v1775_v25  ;;  %v2399_v25 = vshrl.u32 %v3688_v7, 16 }
 0x103   : > { %972 = vrot.lane.b32.xlu1 %v937_v28, %s3723_s25  ;;  %v3681_v28 = vld [vmem:[%s3782_s23 + $0x98] sm:$0xff]   ;;  %v2013_v59 = vrot.slane %v3682_v60, 2  ;;  %v2392_v18 = vrot.slane %v2390_v61, 2  ;;  %v2325_v16 = vsel %vm2236_vm4, %v4588_v54, %v2324_v2  ;;  %v2334_v4 = vsel %vm2236_vm4, %v2324_v2, %v4050_v58 }
 0x104   : > { %v1563_v43 = vpop.permute.xlu0 %1562  ;;  %v2029_v50 = vrot.slane %v3681_v28, 2 }
 0x105   : > { %v1579_v19 = vpop.permute.xlu1 %1578  ;;  %1612 = vst.msk [vmem:[#allocation2 + $0x28] sm:$0xff] %vm1606_vm11, %v1563_v43 }
 0x106   : > { %1620 = vst.msk [vmem:[#allocation2 + $0x68] sm:$0xff] %vm1606_vm11, %v1579_v19  ;;  %1194 = vrot.lane.b32.xlu0 %v1159_v47, %s3722_s24  ;;  %v2030_v19 = vsel %vm1755_vm1, %v2027_v49, %v2029_v50  ;;  %v2031_v47 = vrot.slane %v3683_v29, 2 }
 0x107   : > { %1210 = vrot.lane.b32.xlu1 %v1175_v51, %s3722_s24  ;;  %v2393_v51 = vshll.u32 %v3686_v21, 16 }
 0x108   : > { %v1802_v44 = vpop.permute.xlu0 %1801  ;;  %v2032_v10 = vsel %vm1755_vm1, %v2029_v50, %v2031_v47 }
 0x109   : > { %v1818_v45 = vpop.permute.xlu1 %1817  ;;  %1852 = vst.msk [vmem:[#allocation2 + $0x20] sm:$0xff] %vm1847_vm12, %v1802_v44  ;;  %v2395_v17 = vrot.slane %v2393_v51, 3 }
 0x10a   : > { %1860 = vst.msk [vmem:[#allocation2 + $0x60] sm:$0xff] %vm1847_vm12, %v1818_v45  ;;  %1196 = vrot.lane.b32.xlu0 %v1161_v38, %s3722_s24  ;;  %v2401_v45 = vrot.slane %v2399_v25, 2 }
 0x10b   : > { %1212 = vrot.lane.b32.xlu1 %v1177_v11, %s3722_s24  ;;  %v2014_v11 = vsel %vm1755_vm1, %v2011_v35, %v2013_v59  ;;  %v2396_v49 = vor.u32 %v2395_v17, %v2392_v18  ;;  %v2016_v35 = vsel %vm1755_vm1, %v2013_v59, %v2015_v57  ;;  %v3692_v57 = vld [vmem:[%s3782_s23 + $0x58] sm:$0xff]  }
 0x10c   : > { %v1804_v1 = vpop.permute.xlu0 %1803  ;;  %v2405_v24 = vor.u32 %v2404_v34, %v2401_v45  ;;  %v2628_v54 = vrot.slane %v3692_v57, 3 }
 0x10d   : > { %v1820_v52 = vpop.permute.xlu1 %1819  ;;  %1853 = vst.msk [vmem:[#allocation2 + $0x28] sm:$0xff] %vm1847_vm12, %v1804_v1  ;;  %v2644_v1 = vrot.slane %v3691_v23, 3 }
 0x10e   : > { %1861 = vst.msk [vmem:[#allocation2 + $0x68] sm:$0xff] %vm1847_vm12, %v1820_v52  ;;  %1568 = vrot.lane.b32.xlu0 %v1470_v9, %s3726_s28  ;;  %v2406_v22 = vsel %vm2236_vm4, %v2396_v49, %v2405_v24  ;;  %v2629_v28 = vsel %vm2610_vm5, %v2626_v32, %v2628_v54 }
 0x10f   : > { %1584 = vrot.lane.b32.xlu1 %v1542_v46, %s3726_s28  ;;  %v2397_v46 = vsel %vm2236_vm4, %v4579_v41, %v2396_v49  ;;  %v3693_v41 = vld [vmem:[%s3782_s23 + $0xa0] ss:$0 sps:$4 sm:$0x77]   ;;  %v2645_v56 = vsel %vm2610_vm5, %v2642_v31, %v2644_v1  ;;  %v5017_v31 = vrot.slane %v4056_v8, 3 }
 0x110   : > { %v2042_v6 = vpop.permute.xlu0 %2041  ;;  %v2646_v58 = vrot.slane %v3693_v41, 3 }
 0x111   : > { %v2058_v63 = vpop.permute.xlu1 %2057  ;;  %2092 = vst.msk [vmem:[#allocation2 + $0x20] sm:$0xff] %vm2087_vm13, %v2042_v6 }
 0x112   : > { %2100 = vst.msk [vmem:[#allocation2 + $0x60] sm:$0xff] %vm2087_vm13, %v2058_v63  ;;  %1570 = vrot.lane.b32.xlu0 %v1479_v30, %s3726_s28  ;;  %v2647_v39 = vsel %vm2610_vm5, %v2644_v1, %v2646_v58  ;;  %v4860_v1 = vstv %s2995_s12 }
 0x113   : > { %1586 = vrot.lane.b32.xlu1 %v1551_v33, %s3726_s28 }
 0x114   : > { %v2044_v12 = vpop.permute.xlu0 %2043 }
 0x115   : > { %v2060_v3 = vpop.permute.xlu1 %2059  ;;  %2093 = vst.msk [vmem:[#allocation2 + $0x28] sm:$0xff] %vm2087_vm13, %v2044_v12 }
 0x116   : > { %2101 = vst.msk [vmem:[#allocation2 + $0x68] sm:$0xff] %vm2087_vm13, %v2060_v3  ;;  %1809 = vrot.lane.b32.xlu0 %v1774_v14, %s3724_s26  ;;  %v2631_v3 = vsel %vm2610_vm5, %v2628_v54, %v5017_v31 }
 0x117   : > { %1825 = vrot.lane.b32.xlu1 %v1790_v48, %s3724_s26 }
 0x118   : > { %v2416_v37 = vpop.permute.xlu0 %2415 }
 0x119   : > { %v2432_v53 = vpop.permute.xlu1 %2431  ;;  %2466 = vst.msk [vmem:[#allocation2 + $0x20] sm:$0xff] %vm2461_vm14, %v2416_v37 }
 0x11a   : > { %2474 = vst.msk [vmem:[#allocation2 + $0x60] sm:$0xff] %vm2461_vm14, %v2432_v53  ;;  %1811 = vrot.lane.b32.xlu0 %v1776_v62, %s3724_s26 }
 0x11b   : > { %1827 = vrot.lane.b32.xlu1 %v1792_v0, %s3724_s26 }
 0x11c   : > { %v2418_v20 = vpop.permute.xlu0 %2417 }
 0x11d   : > { %v2434_v43 = vpop.permute.xlu1 %2433  ;;  %2467 = vst.msk [vmem:[#allocation2 + $0x28] sm:$0xff] %vm2461_vm14, %v2418_v20 }
 0x11e   : > { %2475 = vst.msk [vmem:[#allocation2 + $0x68] sm:$0xff] %vm2461_vm14, %v2434_v43  ;;  %2049 = vrot.lane.b32.xlu0 %v2014_v11, %s3727_s29 }
 0x11f   : > { %2065 = vrot.lane.b32.xlu1 %v2030_v19, %s3727_s29 }
 0x120   : > { %v2657_v44 = vpop.permute.xlu0 %2656 }
 0x121   : > { %v2673_v38 = vpop.permute.xlu1 %2672  ;;  %2707 = vst.msk [vmem:[#allocation2 + $0x20] sm:$0xff] %vm2702_vm15, %v2657_v44 }
 0x122   : > { %2715 = vst.msk [vmem:[#allocation2 + $0x60] sm:$0xff] %vm2702_vm15, %v2673_v38  ;;  %2051 = vrot.lane.b32.xlu0 %v2016_v35, %s3727_s29 }
 0x123   : > { %2067 = vrot.lane.b32.xlu1 %v2032_v10, %s3727_s29 }
 0x124   : > { %v710_v9 = vpop.permute.xlu0 %709 }
 0x125   : > { %v726_v52 = vpop.permute.xlu1 %725  ;;  %758 = vst.msk [vmem:[#allocation2 + $0x30] sm:$0xff] %vm751_vm8, %v710_v9 }
 0x126   : > { %766 = vst.msk [vmem:[#allocation2 + $0x70] sm:$0xff] %vm751_vm8, %v726_v52  ;;  %2423 = vrot.lane.b32.xlu0 %v2325_v16, %s3728_s30 }
 0x127   : > { %2439 = vrot.lane.b32.xlu1 %v2397_v46, %s3728_s30 }
 0x128   : > { %v2659_v63 = vpop.permute.xlu0 %2658  ;;  %v2725_v30 = vld [vmem:[#allocation2 + $0x20] sm:$0xff] }
 0x129   : > { %v2675_v33 = vpop.permute.xlu1 %2674  ;;  %v2733_v55 = vld [vmem:[#allocation2 + $0x60] sm:$0xff]  ;;  %2708 = vst.msk [vmem:[#allocation2 + $0x28] sm:$0xff] %vm2702_vm15, %v2659_v63  ;;  %3455 = vmatprep.mubr.msk.bf16.mxu0 %vm2759_vm7, %v2725_v30 }
 0x12a   : > { %2716 = vst.msk [vmem:[#allocation2 + $0x68] sm:$0xff] %vm2702_vm15, %v2675_v33  ;;  %3471 = vmatprep.mubr.msk.bf16.mxu1 %vm2759_vm7, %v2733_v55  ;;  %2425 = vrot.lane.b32.xlu0 %v2334_v4, %s3728_s30  ;;  %v4865_v55 = vld [vmem:[%s5014_s3] ss:$0 sm:$0xff] }
 0x12b   : > { %2441 = vrot.lane.b32.xlu1 %v2406_v22, %s3728_s30 }
 0x12c   : > { %v712_v48 = vpop.permute.xlu0 %711 }
 0x12d   : > { %v728_v6 = vpop.permute.xlu1 %727  ;;  %759 = vst.msk [vmem:[#allocation2 + $0x38] sm:$0xff] %vm751_vm8, %v712_v48 }
 0x12e   : > { %767 = vst.msk [vmem:[#allocation2 + $0x78] sm:$0xff] %vm751_vm8, %v728_v6  ;;  %2664 = vrot.lane.b32.xlu0 %v2629_v28, %s3729_s5 }
 0x12f   : > { %2680 = vrot.lane.b32.xlu1 %v2645_v56, %s3729_s5 }
 0x130   : > { %v951_v15 = vpop.permute.xlu0 %950  ;;  %v2726_v32 = vld [vmem:[#allocation2 + $0x28] sm:$0xff] }
 0x131   : > { %v967_v26 = vpop.permute.xlu1 %966  ;;  %v2734_v21 = vld [vmem:[#allocation2 + $0x68] sm:$0xff]  ;;  %999 = vst.msk [vmem:[#allocation2 + $0x30] sm:$0xff] %vm992_vm9, %v951_v15  ;;  %3456 = vmatmul.mubr.msk.bf16.gmra.mrb[8].mxu0 %vm2759_vm7, %v2726_v32 }
 0x132   : > { %1007 = vst.msk [vmem:[#allocation2 + $0x70] sm:$0xff] %vm992_vm9, %v967_v26  ;;  %3472 = vmatmul.mubr.msk.bf16.gmra.mrb[4].mxu1 %vm2759_vm7, %v2734_v21  ;;  %2666 = vrot.lane.b32.xlu0 %v2631_v3, %s3729_s5 }
 0x133   : > { %2682 = vrot.lane.b32.xlu1 %v2647_v39, %s3729_s5 }
 0x134   : > { %v953_v8 = vpop.permute.xlu0 %952 }
 0x135   : > { %v969_v14 = vpop.permute.xlu1 %968  ;;  %1000 = vst.msk [vmem:[#allocation2 + $0x38] sm:$0xff] %vm992_vm9, %v953_v8 }
 0x136   : > { %1008 = vst.msk [vmem:[#allocation2 + $0x78] sm:$0xff] %vm992_vm9, %v969_v14 }
 0x138   : > { %v1191_v36 = vpop.permute.xlu0 %1190 }
 0x139   : > { %v1207_v60 = vpop.permute.xlu1 %1206  ;;  %1239 = vst.msk [vmem:[#allocation2 + $0x30] sm:$0xff] %vm1232_vm10, %v1191_v36 }
 0x13a   : > { %1247 = vst.msk [vmem:[#allocation2 + $0x70] sm:$0xff] %vm1232_vm10, %v1207_v60 }
 0x13c   : > { %v1193_v50 = vpop.permute.xlu0 %1192 }
 0x13d   : > { %v1209_v12 = vpop.permute.xlu1 %1208  ;;  %1240 = vst.msk [vmem:[#allocation2 + $0x38] sm:$0xff] %vm1232_vm10, %v1193_v50 }
 0x13e   : > { %1248 = vst.msk [vmem:[#allocation2 + $0x78] sm:$0xff] %vm1232_vm10, %v1209_v12 }
 0x140   : > { %v1565_v0 = vpop.permute.xlu0 %1564 }
 0x141   : > { %v1581_v29 = vpop.permute.xlu1 %1580  ;;  %1613 = vst.msk [vmem:[#allocation2 + $0x30] sm:$0xff] %vm1606_vm11, %v1565_v0 }
 0x142   : > { %1621 = vst.msk [vmem:[#allocation2 + $0x70] sm:$0xff] %vm1606_vm11, %v1581_v29 }
 0x144   : > { %v1567_v51 = vpop.permute.xlu0 %1566 }
 0x145   : > { %v1583_v61 = vpop.permute.xlu1 %1582  ;;  %1614 = vst.msk [vmem:[#allocation2 + $0x38] sm:$0xff] %vm1606_vm11, %v1567_v51 }
 0x146   : > { %1622 = vst.msk [vmem:[#allocation2 + $0x78] sm:$0xff] %vm1606_vm11, %v1583_v61 }
 0x148   : > { %v1806_v53 = vpop.permute.xlu0 %1805 }
 0x149   : > { %v1822_v7 = vpop.permute.xlu1 %1821  ;;  %1854 = vst.msk [vmem:[#allocation2 + $0x30] sm:$0xff] %vm1847_vm12, %v1806_v53 }
 0x14a   : > { %1862 = vst.msk [vmem:[#allocation2 + $0x70] sm:$0xff] %vm1847_vm12, %v1822_v7 }
 0x14c   : > { %v1808_v59 = vpop.permute.xlu0 %1807 }
 0x14d   : > { %v1824_v62 = vpop.permute.xlu1 %1823  ;;  %1855 = vst.msk [vmem:[#allocation2 + $0x38] sm:$0xff] %vm1847_vm12, %v1808_v59 }
 0x14e   : > { %1863 = vst.msk [vmem:[#allocation2 + $0x78] sm:$0xff] %vm1847_vm12, %v1824_v62 }
 0x150   : > { %v2046_v5 = vpop.permute.xlu0 %2045 }
 0x151   : > { %v2062_v40 = vpop.permute.xlu1 %2061  ;;  %2094 = vst.msk [vmem:[#allocation2 + $0x30] sm:$0xff] %vm2087_vm13, %v2046_v5 }
 0x152   : > { %2102 = vst.msk [vmem:[#allocation2 + $0x70] sm:$0xff] %vm2087_vm13, %v2062_v40 }
 0x154   : > { %v2048_v19 = vpop.permute.xlu0 %2047 }
 0x155   : > { %v2064_v37 = vpop.permute.xlu1 %2063  ;;  %2095 = vst.msk [vmem:[#allocation2 + $0x38] sm:$0xff] %vm2087_vm13, %v2048_v19 }
 0x156   : > { %2103 = vst.msk [vmem:[#allocation2 + $0x78] sm:$0xff] %vm2087_vm13, %v2064_v37 }
 0x158   : > { %v2420_v18 = vpop.permute.xlu0 %2419 }
 0x159   : > { %v2436_v47 = vpop.permute.xlu1 %2435  ;;  %2468 = vst.msk [vmem:[#allocation2 + $0x30] sm:$0xff] %vm2461_vm14, %v2420_v18 }
 0x15a   : > { %2476 = vst.msk [vmem:[#allocation2 + $0x70] sm:$0xff] %vm2461_vm14, %v2436_v47 }
 0x15c   : > { %v2422_v25 = vpop.permute.xlu0 %2421 }
 0x15d   : > { %v2438_v17 = vpop.permute.xlu1 %2437  ;;  %2469 = vst.msk [vmem:[#allocation2 + $0x38] sm:$0xff] %vm2461_vm14, %v2422_v25 }
 0x15e   : > { %2477 = vst.msk [vmem:[#allocation2 + $0x78] sm:$0xff] %vm2461_vm14, %v2438_v17 }
 0x160   : > { %v2661_v43 = vpop.permute.xlu0 %2660 }
 0x161   : > { %v2677_v42 = vpop.permute.xlu1 %2676  ;;  %2709 = vst.msk [vmem:[#allocation2 + $0x30] sm:$0xff] %vm2702_vm15, %v2661_v43 }
 0x162   : > { %2717 = vst.msk [vmem:[#allocation2 + $0x70] sm:$0xff] %vm2702_vm15, %v2677_v42 }
 0x164   : > { %v714_v13 = vpop.permute.xlu0 %713 }
 0x165   : > { %v730_v11 = vpop.permute.xlu1 %729  ;;  %760 = vst.msk [vmem:[#allocation2 + $0x40] sm:$0xff] %vm751_vm8, %v714_v13 }
 0x166   : > { %768 = vst.msk [vmem:[#allocation2 + $0x80] sm:$0xff] %vm751_vm8, %v730_v11 }
 0x168   : > { %v2663_v10 = vpop.permute.xlu0 %2662  ;;  %v2727_v49 = vld [vmem:[#allocation2 + $0x30] sm:$0xff] }
 0x169   : > { %v2679_v27 = vpop.permute.xlu1 %2678  ;;  %v2735_v20 = vld [vmem:[#allocation2 + $0x70] sm:$0xff]  ;;  %2710 = vst.msk [vmem:[#allocation2 + $0x38] sm:$0xff] %vm2702_vm15, %v2663_v10  ;;  %3459 = vmatprep.mubr.msk.bf16.mxu0 %vm2759_vm7, %v2727_v49 }
 0x16a   : > { %2718 = vst.msk [vmem:[#allocation2 + $0x78] sm:$0xff] %vm2702_vm15, %v2679_v27  ;;  %3475 = vmatprep.mubr.msk.bf16.mxu1 %vm2759_vm7, %v2735_v20 }
 0x16c   : > { %v716_v34 = vpop.permute.xlu0 %715 }
 0x16d   : > { %v732_v45 = vpop.permute.xlu1 %731  ;;  %761 = vst.msk [vmem:[#allocation2 + $0x48] sm:$0xff] %vm751_vm8, %v716_v34 }
 0x16e   : > { %769 = vst.msk [vmem:[#allocation2 + $0x88] sm:$0xff] %vm751_vm8, %v732_v45 }
 0x170   : > { %v955_v2 = vpop.permute.xlu0 %954  ;;  %v2728_v44 = vld [vmem:[#allocation2 + $0x38] sm:$0xff] }
 0x171   : > { %v971_v38 = vpop.permute.xlu1 %970  ;;  %v2736_v35 = vld [vmem:[#allocation2 + $0x78] sm:$0xff]  ;;  %1001 = vst.msk [vmem:[#allocation2 + $0x40] sm:$0xff] %vm992_vm9, %v955_v2  ;;  %3460 = vmatmul.mubr.msk.bf16.gmra.mrb[12].mxu0 %vm2759_vm7, %v2728_v44 }
 0x172   : > { %1009 = vst.msk [vmem:[#allocation2 + $0x80] sm:$0xff] %vm992_vm9, %v971_v38  ;;  %3476 = vmatmul.mubr.msk.bf16.gmra.mrb[8].mxu1 %vm2759_vm7, %v2736_v35 }
 0x174   : > { %v957_v24 = vpop.permute.xlu0 %956 }
 0x175   : > { %v973_v46 = vpop.permute.xlu1 %972  ;;  %1002 = vst.msk [vmem:[#allocation2 + $0x48] sm:$0xff] %vm992_vm9, %v957_v24 }
 0x176   : > { %1010 = vst.msk [vmem:[#allocation2 + $0x88] sm:$0xff] %vm992_vm9, %v973_v46 }
 0x178   : > { %v1195_v52 = vpop.permute.xlu0 %1194 }
 0x179   : > { %v1211_v23 = vpop.permute.xlu1 %1210  ;;  %1241 = vst.msk [vmem:[#allocation2 + $0x40] sm:$0xff] %vm1232_vm10, %v1195_v52 }
 0x17a   : > { %1249 = vst.msk [vmem:[#allocation2 + $0x80] sm:$0xff] %vm1232_vm10, %v1211_v23 }
 0x17c   : > { %v1197_v57 = vpop.permute.xlu0 %1196 }
 0x17d   : > { %v1213_v16 = vpop.permute.xlu1 %1212  ;;  %1242 = vst.msk [vmem:[#allocation2 + $0x48] sm:$0xff] %vm1232_vm10, %v1197_v57 }
 0x17e   : > { %1250 = vst.msk [vmem:[#allocation2 + $0x88] sm:$0xff] %vm1232_vm10, %v1213_v16 }
 0x180   : > { %v1569_v22 = vpop.permute.xlu0 %1568 }
 0x181   : > { %v1585_v9 = vpop.permute.xlu1 %1584  ;;  %1615 = vst.msk [vmem:[#allocation2 + $0x40] sm:$0xff] %vm1606_vm11, %v1569_v22 }
 0x182   : > { %1623 = vst.msk [vmem:[#allocation2 + $0x80] sm:$0xff] %vm1606_vm11, %v1585_v9 }
 0x184   : > { %v1571_v4 = vpop.permute.xlu0 %1570 }
 0x185   : > { %v1587_v41 = vpop.permute.xlu1 %1586  ;;  %v3449_v33 = vpop.f32.mrb[0].mxu0  ;;  %1616 = vst.msk [vmem:[#allocation2 + $0x48] sm:$0xff] %vm1606_vm11, %v1571_v4 }
 0x186   : > { %1624 = vst.msk [vmem:[#allocation2 + $0x88] sm:$0xff] %vm1606_vm11, %v1587_v41  ;;  %v2999_v54 = vmul.f32 %v3449_v33, %v4860_v1  ;;  %v2852_v63 = vpop.f32.mrb[1].mxu0 }
 0x187   : > { %v2997_v30 = vmul.f32 %v4860_v1, %v2852_v63  ;;  %v3450_v56 = vpop.f32.mrb[2].mxu0 }
 0x188   : > { %v3042_v58 = vadd.f32 %v4865_v55, %v2999_v54  ;;  %v3000_v6 = vmul.f32 %v3450_v56, %v4860_v1  ;;  %v2855_v28 = vpop.f32.mrb[3].mxu0  ;;  %v1810_v31 = vpop.permute.xlu0 %1809 }
 0x189   : > { %v3040_v48 = vadd.f32 %v4865_v55, %v2997_v30  ;;  %v2998_v39 = vmul.f32 %v4860_v1, %v2855_v28  ;;  %v1826_v26 = vpop.permute.xlu1 %1825  ;;  %1856 = vst.msk [vmem:[#allocation2 + $0x40] sm:$0xff] %vm1847_vm12, %v1810_v31 }
 0x18a   : > { %3078 = vst [vmem:[%s4873_s17 + $0x10] sm:$0xff] %v3042_v58  ;;  %v3043_v21 = vadd.f32 %v4865_v55, %v3000_v6  ;;  %1864 = vst.msk [vmem:[#allocation2 + $0x80] sm:$0xff] %vm1847_vm12, %v1826_v26 }
 0x18b   : > { %3076 = vst [vmem:[%s4873_s17] sm:$0xff] %v3040_v48  ;;  %v3041_v3 = vadd.f32 %v4865_v55, %v2998_v39 }
 0x18c   : > { %3079 = vst [vmem:[%s4873_s17 + $0x18] sm:$0xff] %v3043_v21  ;;  %v1812_v32 = vpop.permute.xlu0 %1811 }
 0x18d   : > { %3077 = vst [vmem:[%s4873_s17 + $0x8] sm:$0xff] %v3041_v3  ;;  %v1828_v15 = vpop.permute.xlu1 %1827  ;;  %1857 = vst.msk [vmem:[#allocation2 + $0x48] sm:$0xff] %vm1847_vm12, %v1812_v32 }
 0x18e   : > { %1865 = vst.msk [vmem:[#allocation2 + $0x88] sm:$0xff] %vm1847_vm12, %v1828_v15 }
 0x190   : > { %v2050_v8 = vpop.permute.xlu0 %2049 }
 0x191   : > { %v2066_v14 = vpop.permute.xlu1 %2065  ;;  %2096 = vst.msk [vmem:[#allocation2 + $0x40] sm:$0xff] %vm2087_vm13, %v2050_v8 }
 0x192   : > { %2104 = vst.msk [vmem:[#allocation2 + $0x80] sm:$0xff] %vm2087_vm13, %v2066_v14 }
 0x194   : > { %v2052_v36 = vpop.permute.xlu0 %2051 }
 0x195   : > { %v2068_v60 = vpop.permute.xlu1 %2067  ;;  %2097 = vst.msk [vmem:[#allocation2 + $0x48] sm:$0xff] %vm2087_vm13, %v2052_v36 }
 0x196   : > { %2105 = vst.msk [vmem:[#allocation2 + $0x88] sm:$0xff] %vm2087_vm13, %v2068_v60 }
 0x198   : > { %v2424_v50 = vpop.permute.xlu0 %2423 }
 0x199   : > { %v2440_v12 = vpop.permute.xlu1 %2439  ;;  %2470 = vst.msk [vmem:[#allocation2 + $0x40] sm:$0xff] %vm2461_vm14, %v2424_v50 }
 0x19a   : > { %2478 = vst.msk [vmem:[#allocation2 + $0x80] sm:$0xff] %vm2461_vm14, %v2440_v12 }
 0x19c   : > { %v2426_v0 = vpop.permute.xlu0 %2425 }
 0x19d   : > { %v2442_v29 = vpop.permute.xlu1 %2441  ;;  %2471 = vst.msk [vmem:[#allocation2 + $0x48] sm:$0xff] %vm2461_vm14, %v2426_v0 }
 0x19e   : > { %2479 = vst.msk [vmem:[#allocation2 + $0x88] sm:$0xff] %vm2461_vm14, %v2442_v29 }
 0x1a0   : > { %v2665_v51 = vpop.permute.xlu0 %2664 }
 0x1a1   : > { %v2681_v61 = vpop.permute.xlu1 %2680  ;;  %2711 = vst.msk [vmem:[#allocation2 + $0x40] sm:$0xff] %vm2702_vm15, %v2665_v51 }
 0x1a2   : > { %2719 = vst.msk [vmem:[#allocation2 + $0x80] sm:$0xff] %vm2702_vm15, %v2681_v61 }
 0x1a4   : > { %v2667_v53 = vpop.permute.xlu0 %2666 }
 0x1a5   : > { %v2683_v7 = vpop.permute.xlu1 %2682  ;;  %2712 = vst.msk [vmem:[#allocation2 + $0x48] sm:$0xff] %vm2702_vm15, %v2667_v53 }
 0x1a6   : > { %2720 = vst.msk [vmem:[#allocation2 + $0x88] sm:$0xff] %vm2702_vm15, %v2683_v7 }
 0x1a8   : > { %v2729_v59 = vld [vmem:[#allocation2 + $0x40] sm:$0xff] }
 0x1a9   : > { %v2737_v62 = vld [vmem:[#allocation2 + $0x80] sm:$0xff]  ;;  %3463 = vmatprep.mubr.msk.bf16.mxu0 %vm2759_vm7, %v2729_v59 }
 0x1aa   : > { %3479 = vmatprep.mubr.msk.bf16.mxu1 %vm2759_vm7, %v2737_v62 }
 0x1ac   : > { %v2730_v5 = vld [vmem:[#allocation2 + $0x48] sm:$0xff] }
 0x1ad   : > { %v2738_v40 = vld [vmem:[#allocation2 + $0x88] sm:$0xff]  ;;  %3464 = vmatmul.mubr.msk.bf16.gmra.mrb[16].mxu0 %vm2759_vm7, %v2730_v5 }
 0x1ae   : > { %3480 = vmatmul.mubr.msk.bf16.gmra.mrb[12].mxu1 %vm2759_vm7, %v2738_v40 }
 0x1c4   : > { %v3453_v19 = vpop.f32.mrb[4].mxu0 }
 0x1c5   : > { %v3469_v37 = vpop.f32.mrb[0].mxu1  ;;  %v3003_v17 = vmul.f32 %v3453_v19, %v4860_v1  ;;  %v2868_v25 = vpop.f32.mrb[5].mxu0 }
 0x1c6   : > { %v3019_v47 = vmul.f32 %v3469_v37, %v4860_v1  ;;  %v2932_v18 = vpop.f32.mrb[1].mxu1  ;;  %v3001_v13 = vmul.f32 %v4860_v1, %v2868_v25  ;;  %v3454_v27 = vpop.f32.mrb[6].mxu0 }
 0x1c7   : > { %v3017_v42 = vmul.f32 %v4860_v1, %v2932_v18  ;;  %v3470_v43 = vpop.f32.mrb[2].mxu1  ;;  %v3046_v49 = vadd.f32 %v4865_v55, %v3003_v17  ;;  %v3004_v34 = vmul.f32 %v3454_v27, %v4860_v1  ;;  %v2871_v38 = vpop.f32.mrb[7].mxu0 }
 0x1c8   : > { %v3062_v11 = vadd.f32 %v4865_v55, %v3019_v47  ;;  %v3020_v20 = vmul.f32 %v3470_v43, %v4860_v1  ;;  %v2935_v10 = vpop.f32.mrb[3].mxu1  ;;  %v3044_v2 = vadd.f32 %v4865_v55, %v3001_v13  ;;  %v3002_v46 = vmul.f32 %v4860_v1, %v2871_v38 }
 0x1c9   : > { %v3060_v45 = vadd.f32 %v4865_v55, %v3017_v42  ;;  %v3018_v35 = vmul.f32 %v4860_v1, %v2935_v10  ;;  %3082 = vst [vmem:[%s4873_s17 + $0x30] sm:$0xff] %v3046_v49  ;;  %v3047_v24 = vadd.f32 %v4865_v55, %v3004_v34 }
 0x1ca   : > { %3098 = vst [vmem:[%s4873_s17 + $0xb0] sm:$0xff] %v3062_v11  ;;  %v3063_v44 = vadd.f32 %v4865_v55, %v3020_v20  ;;  %3080 = vst [vmem:[%s4873_s17 + $0x20] sm:$0xff] %v3044_v2  ;;  %v3045_v52 = vadd.f32 %v4865_v55, %v3002_v46 }
 0x1cb   : > { %3096 = vst [vmem:[%s4873_s17 + $0xa0] sm:$0xff] %v3060_v45  ;;  %v3061_v23 = vadd.f32 %v4865_v55, %v3018_v35  ;;  %3083 = vst [vmem:[%s4873_s17 + $0x38] sm:$0xff] %v3047_v24 }
 0x1cc   : > { %3099 = vst [vmem:[%s4873_s17 + $0xb8] sm:$0xff] %v3063_v44  ;;  %3081 = vst [vmem:[%s4873_s17 + $0x28] sm:$0xff] %v3045_v52 }
 0x1cd   : > { %3097 = vst [vmem:[%s4873_s17 + $0xa8] sm:$0xff] %v3061_v23 }
 0x204   : > { %v3457_v57 = vpop.f32.mrb[8].mxu0 }
 0x205   : > { %v3473_v16 = vpop.f32.mrb[4].mxu1  ;;  %v3007_v41 = vmul.f32 %v3457_v57, %v4860_v1  ;;  %v2884_v33 = vpop.f32.mrb[9].mxu0 }
 0x206   : > { %v3023_v9 = vmul.f32 %v3473_v16, %v4860_v1  ;;  %v2948_v22 = vpop.f32.mrb[5].mxu1  ;;  %v3005_v30 = vmul.f32 %v4860_v1, %v2884_v33  ;;  %v3458_v56 = vpop.f32.mrb[10].mxu0 }
 0x207   : > { %v3021_v4 = vmul.f32 %v4860_v1, %v2948_v22  ;;  %v3474_v54 = vpop.f32.mrb[6].mxu1  ;;  %v3050_v28 = vadd.f32 %v4865_v55, %v3007_v41  ;;  %v3008_v39 = vmul.f32 %v3458_v56, %v4860_v1  ;;  %v2887_v26 = vpop.f32.mrb[11].mxu0 }
 0x208   : > { %v3066_v63 = vadd.f32 %v4865_v55, %v3023_v9  ;;  %v3024_v58 = vmul.f32 %v3474_v54, %v4860_v1  ;;  %v2951_v6 = vpop.f32.mrb[7].mxu1  ;;  %v3048_v31 = vadd.f32 %v4865_v55, %v3005_v30  ;;  %v3006_v15 = vmul.f32 %v4860_v1, %v2887_v26 }
 0x209   : > { %v3064_v48 = vadd.f32 %v4865_v55, %v3021_v4  ;;  %v3022_v21 = vmul.f32 %v4860_v1, %v2951_v6  ;;  %3086 = vst [vmem:[%s4873_s17 + $0x50] sm:$0xff] %v3050_v28  ;;  %v3051_v32 = vadd.f32 %v4865_v55, %v3008_v39 }
 0x20a   : > { %3102 = vst [vmem:[%s4873_s17 + $0xd0] sm:$0xff] %v3066_v63  ;;  %v3067_v3 = vadd.f32 %v4865_v55, %v3024_v58  ;;  %3084 = vst [vmem:[%s4873_s17 + $0x40] sm:$0xff] %v3048_v31  ;;  %v3049_v8 = vadd.f32 %v4865_v55, %v3006_v15 }
 0x20b   : > { %3100 = vst [vmem:[%s4873_s17 + $0xc0] sm:$0xff] %v3064_v48  ;;  %v3065_v14 = vadd.f32 %v4865_v55, %v3022_v21  ;;  %3087 = vst [vmem:[%s4873_s17 + $0x58] sm:$0xff] %v3051_v32 }
 0x20c   : > { %3103 = vst [vmem:[%s4873_s17 + $0xd8] sm:$0xff] %v3067_v3  ;;  %3085 = vst [vmem:[%s4873_s17 + $0x48] sm:$0xff] %v3049_v8 }
 0x20d   : > { %3101 = vst [vmem:[%s4873_s17 + $0xc8] sm:$0xff] %v3065_v14 }
 0x244   : > { %v3461_v36 = vpop.f32.mrb[12].mxu0 }
 0x245   : > { %v3477_v60 = vpop.f32.mrb[8].mxu1  ;;  %v3011_v29 = vmul.f32 %v3461_v36, %v4860_v1  ;;  %v2900_v0 = vpop.f32.mrb[13].mxu0 }
 0x246   : > { %v3027_v12 = vmul.f32 %v3477_v60, %v4860_v1  ;;  %v2964_v50 = vpop.f32.mrb[9].mxu1  ;;  %v3009_v53 = vmul.f32 %v4860_v1, %v2900_v0  ;;  %v3462_v62 = vpop.f32.mrb[14].mxu0 }
 0x247   : > { %v3025_v61 = vmul.f32 %v4860_v1, %v2964_v50  ;;  %v3478_v51 = vpop.f32.mrb[10].mxu1  ;;  %v3054_v5 = vadd.f32 %v4865_v55, %v3011_v29  ;;  %v3012_v19 = vmul.f32 %v3462_v62, %v4860_v1  ;;  %v2903_v47 = vpop.f32.mrb[15].mxu0 }
 0x248   : > { %v3070_v7 = vadd.f32 %v4865_v55, %v3027_v12  ;;  %v3028_v59 = vmul.f32 %v3478_v51, %v4860_v1  ;;  %v2967_v40 = vpop.f32.mrb[11].mxu1  ;;  %v3052_v17 = vadd.f32 %v4865_v55, %v3009_v53  ;;  %v3010_v42 = vmul.f32 %v4860_v1, %v2903_v47 }
 0x249   : > { %v3068_v37 = vadd.f32 %v4865_v55, %v3025_v61  ;;  %v3026_v18 = vmul.f32 %v4860_v1, %v2967_v40  ;;  %3090 = vst [vmem:[%s4873_s17 + $0x70] sm:$0xff] %v3054_v5  ;;  %v3055_v43 = vadd.f32 %v4865_v55, %v3012_v19 }
 0x24a   : > { %3106 = vst [vmem:[%s4873_s17 + $0xf0] sm:$0xff] %v3070_v7  ;;  %v3071_v25 = vadd.f32 %v4865_v55, %v3028_v59  ;;  %3088 = vst [vmem:[%s4873_s17 + $0x60] sm:$0xff] %v3052_v17  ;;  %v3053_v13 = vadd.f32 %v4865_v55, %v3010_v42 }
 0x24b   : > { %3104 = vst [vmem:[%s4873_s17 + $0xe0] sm:$0xff] %v3068_v37  ;;  %v3069_v11 = vadd.f32 %v4865_v55, %v3026_v18  ;;  %3091 = vst [vmem:[%s4873_s17 + $0x78] sm:$0xff] %v3055_v43 }
 0x24c   : > { %3107 = vst [vmem:[%s4873_s17 + $0xf8] sm:$0xff] %v3071_v25  ;;  %3089 = vst [vmem:[%s4873_s17 + $0x68] sm:$0xff] %v3053_v13 }
 0x24d   : > { %3105 = vst [vmem:[%s4873_s17 + $0xe8] sm:$0xff] %v3069_v11 }
 0x280   : > { %v3465_v20 = vpop.f32.mrb[16].mxu0 }
 0x281   : > { %v3481_v27 = vpop.f32.mrb[12].mxu1  ;;  %v3015_v45 = vmul.f32 %v3465_v20, %v4860_v1  ;;  %v2916_v34 = vpop.f32.mrb[17].mxu0 }
 0x282   : > { %v3031_v10 = vmul.f32 %v3481_v27, %v4860_v1  ;;  %v2980_v49 = vpop.f32.mrb[13].mxu1  ;;  %v3013_v44 = vmul.f32 %v4860_v1, %v2916_v34  ;;  %v3466_v46 = vpop.f32.mrb[18].mxu0 }
 0x283   : > { %v3029_v38 = vmul.f32 %v4860_v1, %v2980_v49  ;;  %v3482_v35 = vpop.f32.mrb[14].mxu1  ;;  %v3058_v52 = vadd.f32 %v4865_v55, %v3015_v45  ;;  %v3016_v57 = vmul.f32 %v3466_v46, %v4860_v1  ;;  %v2919_v9 = vpop.f32.mrb[19].mxu0 }
 0x284   : > { %v3074_v2 = vadd.f32 %v4865_v55, %v3031_v10  ;;  %v3032_v24 = vmul.f32 %v3482_v35, %v4860_v1  ;;  %v2983_v23 = vpop.f32.mrb[15].mxu1  ;;  %v3056_v41 = vadd.f32 %v4865_v55, %v3013_v44  ;;  %v3014_v4 = vmul.f32 %v4860_v1, %v2919_v9 }
 0x285   : > { %v3072_v16 = vadd.f32 %v4865_v55, %v3029_v38  ;;  %v3030_v22 = vmul.f32 %v4860_v1, %v2983_v23  ;;  %3094 = vst [vmem:[%s4873_s17 + $0x90] sm:$0xff] %v3058_v52  ;;  %v3059_v54 = vadd.f32 %v4865_v55, %v3016_v57 }
 0x286   : > { %3110 = vst [vmem:[%s4873_s17 + $0x110] sm:$0xff] %v3074_v2  ;;  %v3075_v33 = vadd.f32 %v4865_v55, %v3032_v24  ;;  %3092 = vst [vmem:[%s4873_s17 + $0x80] sm:$0xff] %v3056_v41  ;;  %v3057_v30 = vadd.f32 %v4865_v55, %v3014_v4 }
 0x287   : > { %3108 = vst [vmem:[%s4873_s17 + $0x100] sm:$0xff] %v3072_v16  ;;  %v3073_v63 = vadd.f32 %v4865_v55, %v3030_v22  ;;  %3095 = vst [vmem:[%s4873_s17 + $0x98] sm:$0xff] %v3059_v54 }
 0x288   : > { %3111 = vst [vmem:[%s4873_s17 + $0x118] sm:$0xff] %v3075_v33  ;;  %3093 = vst [vmem:[%s4873_s17 + $0x88] sm:$0xff] %v3057_v30 }
 0x289   : > { %3109 = vst [vmem:[%s4873_s17 + $0x108] sm:$0xff] %v3073_v63 }
 0x28a PF: > { %s15_s19 = sadd.s32 1, %s3720_s19   ;;  %s5018_s17 = smov %s3716_s18 }
 0x28b   : > { %p12_p5 = scmp.ge.s32.totalorder %s15_s19, 4   ;;  %s5019_s18 = smov %s5021_s0 }
 0x28d   :  { %14 = sbr.rel (!%p12_p5) target bundleno = 2 (0x2), region = 76 }

</bundles_post_ra>
